<compile_context>
chip_gen: v7x
topology: tpu7x:2x2x1
jax: 0.10.0
libtpu: 0.0.40
codegen_flags: <defaults>
</compile_context>

<pallas_src>
import functools

import numpy as np
import jax
import jax.numpy as jnp
from jax.experimental import pallas as pl
from jax.experimental.pallas import tpu as pltpu

# ----------------------------------------------------------------------------
# Static geometry implied by the module (192 = 8 * 4 * 6  ->  input 30 x 45).
# ----------------------------------------------------------------------------
H, W = 30, 45
K1, S1 = 6, 3
HO1, WO1 = (H - K1) // S1 + 1, (W - K1) // S1 + 1      # 9, 14
K2, S2 = 3, 2
HO2, WO2 = (HO1 - K2) // S2 + 1, (WO1 - K2) // S2 + 1  # 4, 6
C1 = 8                                                  # conv1 out channels
C2 = 8                                                  # conv2 out channels
P1 = HO1 * WO1                                          # 126 conv1 positions
P1P = 128                                               # lane-padded
KCOLS = K1 * K1                                         # 36 patch columns
FLAT = C2 * HO2 * WO2                                   # 192
HID = 128
MAX_TB = 8                                              # images per grid step


# ----------------------------------------------------------------------------
# Fused Pallas kernel (one grid step == one tile of `tb` images)
# ----------------------------------------------------------------------------
def _fused_net_kernel(p1t_ref, w1t_ref, b1_ref, w2d_ref, b2_ref,
                      wf1_ref, bf1_ref, wf2_ref, bf2_ref, o_ref, *, tb):
    w1t = w1t_ref[...]                                    # [C1, 36]
    b1 = b1_ref[...]                                      # [C1, 1]

    # conv1 per image as a transposed GEMM (lane-dense output): one vreg each.
    # Padded lanes 126..127 hold relu(b1); the matching rows of w2dense are
    # zero, so they contribute nothing downstream.
    y1 = []
    for t in range(tb):
        y = jnp.dot(w1t, p1t_ref[t], preferred_element_type=jnp.float32)
        y1.append(jnp.maximum(y + b1, 0.0))               # [C1, 128]

    # conv2 + PyTorch NCHW flatten as a dense GEMM, batched over the image
    # tile per input channel: gather the channel-c row of every image into a
    # [tb, 128] slab (cheap sublane concat), then one MXU GEMM per channel.
    acc = jnp.zeros((tb, FLAT), jnp.float32)
    for c in range(C1):
        yc = jnp.concatenate([y1[t][c:c + 1, :] for t in range(tb)], axis=0)
        acc = acc + jnp.dot(yc, w2d_ref[c],
                            preferred_element_type=jnp.float32)
    h = jnp.maximum(acc + b2_ref[...], 0.0)               # [tb, 192]

    # fc1 + ReLU (batched across the tile)
    h = jnp.dot(h, wf1_ref[...], preferred_element_type=jnp.float32)
    h = jnp.maximum(h + bf1_ref[...], 0.0)                # [tb, 128]

    # fc2
    out = jnp.dot(h, wf2_ref[...], preferred_element_type=jnp.float32)
    o_ref[...] = (out + bf2_ref[...]).astype(o_ref.dtype)  # [tb, A]


# ----------------------------------------------------------------------------
# Host-side glue
# ----------------------------------------------------------------------------
def _im2col_conv1_T(x):
    """x: [B, 1, 30, 45] -> transposed, lane-padded patches [B, 36, 128].

    element [b, kh*6+kw, ho*14+wo] = x[b, 0, 3*ho + kh, 3*wo + kw]
    """
    B = x.shape[0]
    cols = []
    for kh in range(K1):
        for kw in range(K1):
            sl = x[:, 0,
                   kh:kh + S1 * (HO1 - 1) + 1:S1,
                   kw:kw + S1 * (WO1 - 1) + 1:S1]          # [B, 9, 14]
            cols.append(sl.reshape(B, P1))
    p = jnp.stack(cols, axis=1)                            # [B, 36, 126]
    return jnp.pad(p, ((0, 0), (0, 0), (0, P1P - P1)))     # [B, 36, 128]


@jax.jit
def net_forward(params, x_nchw):
    B = x_nchw.shape[0]
    A = params["w_fc2"].shape[1]

    p1t = _im2col_conv1_T(x_nchw)                          # [B, 36, 128]

    # Tile the batch: up to 8 images per grid step (pad if needed).
    TB = B if B <= MAX_TB else MAX_TB
    B_pad = ((B + TB - 1) // TB) * TB
    if B_pad != B:
        p1t = jnp.pad(p1t, ((0, B_pad - B), (0, 0), (0, 0)))

    def _const_spec(arr):
        nd = arr.ndim
        return pl.BlockSpec(arr.shape, lambda b: (0,) * nd)

    out = pl.pallas_call(
        functools.partial(_fused_net_kernel, tb=TB),
        out_shape=jax.ShapeDtypeStruct((B_pad, A), jnp.float32),
        grid_spec=pltpu.PrefetchScalarGridSpec(
            num_scalar_prefetch=0,
            grid=(B_pad // TB,),
            in_specs=[
                pl.BlockSpec((TB, KCOLS, P1P), lambda b: (b, 0, 0)),
                _const_spec(params["w1t"]),
                _const_spec(params["b1col"]),
                _const_spec(params["w2dense"]),
                _const_spec(params["b2row"]),
                _const_spec(params["w_fc1"]),
                _const_spec(params["b_fc1_row"]),
                _const_spec(params["w_fc2"]),
                _const_spec(params["b_fc2_row"]),
            ],
            out_specs=pl.BlockSpec((TB, A), lambda b: (b, 0)),
        ),
        compiler_params=pltpu.CompilerParams(
            dimension_semantics=("parallel",)),
    )(p1t, params["w1t"], params["b1col"], params["w2dense"], params["b2row"],
      params["w_fc1"], params["b_fc1_row"], params["w_fc2"], params["b_fc2_row"])
    return out[:B]


# ----------------------------------------------------------------------------
# Parameter construction (canonical PyTorch layouts + kernel-side forms)
# ----------------------------------------------------------------------------
def init_params(key, actions):
    ks = jax.random.split(key, 8)
    scale = 0.1
    w1_oihw = scale * jax.random.normal(ks[0], (C1, 1, K1, K1), jnp.float32)
    b1 = scale * jax.random.normal(ks[1], (C1,), jnp.float32)
    w2_oihw = scale * jax.random.normal(ks[2], (C2, C1, K2, K2), jnp.float32)
    b2 = scale * jax.random.normal(ks[3], (C2,), jnp.float32)
    w_fc1 = scale * jax.random.normal(ks[4], (FLAT, HID), jnp.float32)
    b_fc1 = scale * jax.random.normal(ks[5], (HID,), jnp.float32)
    w_fc2 = scale * jax.random.normal(ks[6], (HID, actions), jnp.float32)
    b_fc2 = scale * jax.random.normal(ks[7], (actions,), jnp.float32)

    # Dense "conv2 + NCHW flatten" matrix, built once at init.
    # w2dense[c1, p1, j] maps conv1 output (channel c1, position p1=ho1*14+wo1)
    # to flattened conv2 output index j = c2*24 + ho2*6 + wo2 (PyTorch order),
    # so fc1's [192, 128] weight is used unchanged. Rows p1 >= 126 stay zero.
    w2_np = np.asarray(w2_oihw)
    w2d = np.zeros((C1, P1P, FLAT), np.float32)
    for c2 in range(C2):
        for c1 in range(C1):
            for ho2 in range(HO2):
                for wo2 in range(WO2):
                    j = c2 * (HO2 * WO2) + ho2 * WO2 + wo2
                    for kh in range(K2):
                        for kw in range(K2):
                            p1 = (S2 * ho2 + kh) * WO1 + (S2 * wo2 + kw)
                            w2d[c1, p1, j] = w2_np[c2, c1, kh, kw]

    return dict(
        # kernel-side forms
        w1t=w1_oihw.reshape(C1, KCOLS),            # [Cout, Kh*Kw] (Cin=1)
        b1col=b1.reshape(C1, 1),
        w2dense=jnp.asarray(w2d),                  # [8, 128, 192]
        b2row=jnp.repeat(b2, HO2 * WO2).reshape(1, FLAT),
        w_fc1=w_fc1, b_fc1_row=b_fc1.reshape(1, HID),
        w_fc2=w_fc2, b_fc2_row=b_fc2.reshape(1, actions),
        # canonical forms for the pure-JAX reference
        w1_oihw=w1_oihw, b1=b1, w2_oihw=w2_oihw, b2=b2,
    )


def net_forward_reference(params, x_nchw):
    """Pure-JAX (XLA) reference mirroring the PyTorch forward, for validation."""
    hp = jax.lax.Precision.HIGHEST
    dn1 = jax.lax.conv_dimension_numbers(x_nchw.shape, params["w1_oihw"].shape,
                                         ("NCHW", "OIHW", "NCHW"))
    y = jax.lax.conv_general_dilated(x_nchw, params["w1_oihw"], (S1, S1),
                                     "VALID", dimension_numbers=dn1,
                                     precision=hp)
    y = jax.nn.relu(y + params["b1"][None, :, None, None])
    dn2 = jax.lax.conv_dimension_numbers(y.shape, params["w2_oihw"].shape,
                                         ("NCHW", "OIHW", "NCHW"))
    y = jax.lax.conv_general_dilated(y, params["w2_oihw"], (S2, S2),
                                     "VALID", dimension_numbers=dn2,
                                     precision=hp)
    y = jax.nn.relu(y + params["b2"][None, :, None, None])
    flat = y.reshape(y.shape[0], -1)                         # PyTorch view(-1,192)
    h = jax.nn.relu(jnp.dot(flat, params["w_fc1"], precision=hp)
                    + params["b_fc1_row"][0])
    return jnp.dot(h, params["w_fc2"], precision=hp) + params["b_fc2_row"][0]


if __name__ == "__main__":
    key = jax.random.PRNGKey(0)
    k_par, k_x = jax.random.split(key)

    ACTIONS = 8
    params = init_params(k_par, ACTIONS)

    # Small batch (whole batch in one grid step, no padding).
    B = 2
    # Input resolution implied by the module: 192 = 8 * 4 * 6 -> H=30, W=45
    x = jax.random.uniform(k_x, (B, 1, H, W), jnp.float32)
    out = jax.block_until_ready(net_forward(params, x))
    assert out.shape == (B, ACTIONS), out.shape
    ref = net_forward_reference(params, x)
    assert jnp.all(jnp.isfinite(out))
    assert jnp.allclose(out, ref, rtol=2e-2, atol=2e-3), (
        float(jnp.max(jnp.abs(out - ref))))

    # Larger, non-multiple-of-tile batch (exercises padding + multi-step grid).
    B2 = 10
    x2 = jax.random.uniform(jax.random.fold_in(k_x, 1), (B2, 1, H, W),
                            jnp.float32)
    out2 = jax.block_until_ready(net_forward(params, x2))
    assert out2.shape == (B2, ACTIONS), out2.shape
    ref2 = net_forward_reference(params, x2)
    assert jnp.all(jnp.isfinite(out2))
    assert jnp.allclose(out2, ref2, rtol=2e-2, atol=2e-3), (
        float(jnp.max(jnp.abs(out2 - ref2))))

    print("KERNEL_OK")
</pallas_src>

<mosaic_0001>
module attributes {stable_mosaic.version = 11 : i64} {
  func.func @_fused_net_kernel(%arg0: i32, %arg1: memref<2x36x128xf32, #tpu.memory_space<vmem>>, %arg2: memref<8x36xf32, #tpu.memory_space<vmem>>, %arg3: memref<8x1xf32, #tpu.memory_space<vmem>>, %arg4: memref<8x128x192xf32, #tpu.memory_space<vmem>>, %arg5: memref<1x192xf32, #tpu.memory_space<vmem>>, %arg6: memref<192x128xf32, #tpu.memory_space<vmem>>, %arg7: memref<1x128xf32, #tpu.memory_space<vmem>>, %arg8: memref<128x8xf32, #tpu.memory_space<vmem>>, %arg9: memref<1x8xf32, #tpu.memory_space<vmem>>, %arg10: memref<2x8xf32, #tpu.memory_space<vmem>>) attributes {dimension_semantics = [#tpu.dimension_semantics<parallel>], iteration_bounds = array<i64: 1>, scalar_prefetch = 0 : i64, scratch_operands = 0 : i64, tpu.core_type = #tpu.core_type<tc>, window_params = [{transform_indices = @transform_0, window_bounds = array<i64: 2, 36, 128>}, {pipeline_mode = #tpu.pipeline_mode<synchronous>, transform_indices = @transform_1, window_bounds = array<i64: 8, 36>}, {pipeline_mode = #tpu.pipeline_mode<synchronous>, transform_indices = @transform_2, window_bounds = array<i64: 8, 1>}, {pipeline_mode = #tpu.pipeline_mode<synchronous>, transform_indices = @transform_3, window_bounds = array<i64: 8, 128, 192>}, {pipeline_mode = #tpu.pipeline_mode<synchronous>, transform_indices = @transform_4, window_bounds = array<i64: 1, 192>}, {pipeline_mode = #tpu.pipeline_mode<synchronous>, transform_indices = @transform_5, window_bounds = array<i64: 192, 128>}, {pipeline_mode = #tpu.pipeline_mode<synchronous>, transform_indices = @transform_6, window_bounds = array<i64: 1, 128>}, {pipeline_mode = #tpu.pipeline_mode<synchronous>, transform_indices = @transform_7, window_bounds = array<i64: 128, 8>}, {pipeline_mode = #tpu.pipeline_mode<synchronous>, transform_indices = @transform_8, window_bounds = array<i64: 1, 8>}, {transform_indices = @transform_9, window_bounds = array<i64: 2, 8>}]} {
    %c0 = arith.constant 0 : index
    %c0_0 = arith.constant 0 : index
    %0 = vector.load %arg2[%c0, %c0_0] : memref<8x36xf32, #tpu.memory_space<vmem>>, vector<8x36xf32>
    %c0_1 = arith.constant 0 : index
    %c0_2 = arith.constant 0 : index
    %1 = vector.load %arg3[%c0_1, %c0_2] : memref<8x1xf32, #tpu.memory_space<vmem>>, vector<8x1xf32>
    %c0_3 = arith.constant 0 : index
    %c0_4 = arith.constant 0 : index
    %c0_5 = arith.constant 0 : index
    %2 = vector.load %arg1[%c0_3, %c0_4, %c0_5] : memref<2x36x128xf32, #tpu.memory_space<vmem>>, vector<1x36x128xf32>
    %3 = vector.shape_cast %2 : vector<1x36x128xf32> to vector<36x128xf32>
    %cst = arith.constant dense<0.000000e+00> : vector<8x128xf32>
    %4 = tpu.matmul %0, %3, %cst {dimension_numbers = #tpu.dot_dimension_numbers<[1], [0], [0], [1], [0, 0, 1, 1], [], []>} : vector<8x36xf32>, vector<36x128xf32>, vector<8x128xf32> -> vector<8x128xf32>
    %5 = vector.broadcast %1 : vector<8x1xf32> to vector<8x128xf32>
    %6 = arith.addf %4, %5 : vector<8x128xf32>
    %cst_6 = arith.constant 0.000000e+00 : f32
    %7 = vector.broadcast %cst_6 : f32 to vector<8x128xf32>
    %8 = arith.maximumf %6, %7 : vector<8x128xf32>
    %c1 = arith.constant 1 : index
    %c0_7 = arith.constant 0 : index
    %c0_8 = arith.constant 0 : index
    %9 = vector.load %arg1[%c1, %c0_7, %c0_8] : memref<2x36x128xf32, #tpu.memory_space<vmem>>, vector<1x36x128xf32>
    %10 = vector.shape_cast %9 : vector<1x36x128xf32> to vector<36x128xf32>
    %cst_9 = arith.constant dense<0.000000e+00> : vector<8x128xf32>
    %11 = tpu.matmul %0, %10, %cst_9 {dimension_numbers = #tpu.dot_dimension_numbers<[1], [0], [0], [1], [0, 0, 1, 1], [], []>} : vector<8x36xf32>, vector<36x128xf32>, vector<8x128xf32> -> vector<8x128xf32>
    %12 = vector.broadcast %1 : vector<8x1xf32> to vector<8x128xf32>
    %13 = arith.addf %11, %12 : vector<8x128xf32>
    %cst_10 = arith.constant 0.000000e+00 : f32
    %14 = vector.broadcast %cst_10 : f32 to vector<8x128xf32>
    %15 = arith.maximumf %13, %14 : vector<8x128xf32>
    %cst_11 = arith.constant 0.000000e+00 : f32
    %16 = vector.broadcast %cst_11 : f32 to vector<2x192xf32>
    %17 = vector.extract_strided_slice %8 {offsets = [0, 0], sizes = [1, 128], strides = [1, 1]} : vector<8x128xf32> to vector<1x128xf32>
    %18 = vector.extract_strided_slice %15 {offsets = [0, 0], sizes = [1, 128], strides = [1, 1]} : vector<8x128xf32> to vector<1x128xf32>
    %19 = tpu.concatenate %17, %18 in 0 : vector<1x128xf32>, vector<1x128xf32> -> vector<2x128xf32>
    %c0_12 = arith.constant 0 : index
    %c0_13 = arith.constant 0 : index
    %c0_14 = arith.constant 0 : index
    %20 = vector.load %arg4[%c0_12, %c0_13, %c0_14] : memref<8x128x192xf32, #tpu.memory_space<vmem>>, vector<1x128x192xf32>
    %21 = vector.shape_cast %20 : vector<1x128x192xf32> to vector<128x192xf32>
    %cst_15 = arith.constant dense<0.000000e+00> : vector<2x192xf32>
    %22 = tpu.matmul %19, %21, %cst_15 {dimension_numbers = #tpu.dot_dimension_numbers<[1], [0], [0], [1], [0, 0, 1, 1], [], []>} : vector<2x128xf32>, vector<128x192xf32>, vector<2x192xf32> -> vector<2x192xf32>
    %23 = arith.addf %16, %22 : vector<2x192xf32>
    %24 = vector.extract_strided_slice %8 {offsets = [1, 0], sizes = [1, 128], strides = [1, 1]} : vector<8x128xf32> to vector<1x128xf32>
    %25 = vector.extract_strided_slice %15 {offsets = [1, 0], sizes = [1, 128], strides = [1, 1]} : vector<8x128xf32> to vector<1x128xf32>
    %26 = tpu.concatenate %24, %25 in 0 : vector<1x128xf32>, vector<1x128xf32> -> vector<2x128xf32>
    %c1_16 = arith.constant 1 : index
    %c0_17 = arith.constant 0 : index
    %c0_18 = arith.constant 0 : index
    %27 = vector.load %arg4[%c1_16, %c0_17, %c0_18] : memref<8x128x192xf32, #tpu.memory_space<vmem>>, vector<1x128x192xf32>
    %28 = vector.shape_cast %27 : vector<1x128x192xf32> to vector<128x192xf32>
    %cst_19 = arith.constant dense<0.000000e+00> : vector<2x192xf32>
    %29 = tpu.matmul %26, %28, %cst_19 {dimension_numbers = #tpu.dot_dimension_numbers<[1], [0], [0], [1], [0, 0, 1, 1], [], []>} : vector<2x128xf32>, vector<128x192xf32>, vector<2x192xf32> -> vector<2x192xf32>
    %30 = arith.addf %23, %29 : vector<2x192xf32>
    %31 = vector.extract_strided_slice %8 {offsets = [2, 0], sizes = [1, 128], strides = [1, 1]} : vector<8x128xf32> to vector<1x128xf32>
    %32 = vector.extract_strided_slice %15 {offsets = [2, 0], sizes = [1, 128], strides = [1, 1]} : vector<8x128xf32> to vector<1x128xf32>
    %33 = tpu.concatenate %31, %32 in 0 : vector<1x128xf32>, vector<1x128xf32> -> vector<2x128xf32>
    %c2 = arith.constant 2 : index
    %c0_20 = arith.constant 0 : index
    %c0_21 = arith.constant 0 : index
    %34 = vector.load %arg4[%c2, %c0_20, %c0_21] : memref<8x128x192xf32, #tpu.memory_space<vmem>>, vector<1x128x192xf32>
    %35 = vector.shape_cast %34 : vector<1x128x192xf32> to vector<128x192xf32>
    %cst_22 = arith.constant dense<0.000000e+00> : vector<2x192xf32>
    %36 = tpu.matmul %33, %35, %cst_22 {dimension_numbers = #tpu.dot_dimension_numbers<[1], [0], [0], [1], [0, 0, 1, 1], [], []>} : vector<2x128xf32>, vector<128x192xf32>, vector<2x192xf32> -> vector<2x192xf32>
    %37 = arith.addf %30, %36 : vector<2x192xf32>
    %38 = vector.extract_strided_slice %8 {offsets = [3, 0], sizes = [1, 128], strides = [1, 1]} : vector<8x128xf32> to vector<1x128xf32>
    %39 = vector.extract_strided_slice %15 {offsets = [3, 0], sizes = [1, 128], strides = [1, 1]} : vector<8x128xf32> to vector<1x128xf32>
    %40 = tpu.concatenate %38, %39 in 0 : vector<1x128xf32>, vector<1x128xf32> -> vector<2x128xf32>
    %c3 = arith.constant 3 : index
    %c0_23 = arith.constant 0 : index
    %c0_24 = arith.constant 0 : index
    %41 = vector.load %arg4[%c3, %c0_23, %c0_24] : memref<8x128x192xf32, #tpu.memory_space<vmem>>, vector<1x128x192xf32>
    %42 = vector.shape_cast %41 : vector<1x128x192xf32> to vector<128x192xf32>
    %cst_25 = arith.constant dense<0.000000e+00> : vector<2x192xf32>
    %43 = tpu.matmul %40, %42, %cst_25 {dimension_numbers = #tpu.dot_dimension_numbers<[1], [0], [0], [1], [0, 0, 1, 1], [], []>} : vector<2x128xf32>, vector<128x192xf32>, vector<2x192xf32> -> vector<2x192xf32>
    %44 = arith.addf %37, %43 : vector<2x192xf32>
    %45 = vector.extract_strided_slice %8 {offsets = [4, 0], sizes = [1, 128], strides = [1, 1]} : vector<8x128xf32> to vector<1x128xf32>
    %46 = vector.extract_strided_slice %15 {offsets = [4, 0], sizes = [1, 128], strides = [1, 1]} : vector<8x128xf32> to vector<1x128xf32>
    %47 = tpu.concatenate %45, %46 in 0 : vector<1x128xf32>, vector<1x128xf32> -> vector<2x128xf32>
    %c4 = arith.constant 4 : index
    %c0_26 = arith.constant 0 : index
    %c0_27 = arith.constant 0 : index
    %48 = vector.load %arg4[%c4, %c0_26, %c0_27] : memref<8x128x192xf32, #tpu.memory_space<vmem>>, vector<1x128x192xf32>
    %49 = vector.shape_cast %48 : vector<1x128x192xf32> to vector<128x192xf32>
    %cst_28 = arith.constant dense<0.000000e+00> : vector<2x192xf32>
    %50 = tpu.matmul %47, %49, %cst_28 {dimension_numbers = #tpu.dot_dimension_numbers<[1], [0], [0], [1], [0, 0, 1, 1], [], []>} : vector<2x128xf32>, vector<128x192xf32>, vector<2x192xf32> -> vector<2x192xf32>
    %51 = arith.addf %44, %50 : vector<2x192xf32>
    %52 = vector.extract_strided_slice %8 {offsets = [5, 0], sizes = [1, 128], strides = [1, 1]} : vector<8x128xf32> to vector<1x128xf32>
    %53 = vector.extract_strided_slice %15 {offsets = [5, 0], sizes = [1, 128], strides = [1, 1]} : vector<8x128xf32> to vector<1x128xf32>
    %54 = tpu.concatenate %52, %53 in 0 : vector<1x128xf32>, vector<1x128xf32> -> vector<2x128xf32>
    %c5 = arith.constant 5 : index
    %c0_29 = arith.constant 0 : index
    %c0_30 = arith.constant 0 : index
    %55 = vector.load %arg4[%c5, %c0_29, %c0_30] : memref<8x128x192xf32, #tpu.memory_space<vmem>>, vector<1x128x192xf32>
    %56 = vector.shape_cast %55 : vector<1x128x192xf32> to vector<128x192xf32>
    %cst_31 = arith.constant dense<0.000000e+00> : vector<2x192xf32>
    %57 = tpu.matmul %54, %56, %cst_31 {dimension_numbers = #tpu.dot_dimension_numbers<[1], [0], [0], [1], [0, 0, 1, 1], [], []>} : vector<2x128xf32>, vector<128x192xf32>, vector<2x192xf32> -> vector<2x192xf32>
    %58 = arith.addf %51, %57 : vector<2x192xf32>
    %59 = vector.extract_strided_slice %8 {offsets = [6, 0], sizes = [1, 128], strides = [1, 1]} : vector<8x128xf32> to vector<1x128xf32>
    %60 = vector.extract_strided_slice %15 {offsets = [6, 0], sizes = [1, 128], strides = [1, 1]} : vector<8x128xf32> to vector<1x128xf32>
    %61 = tpu.concatenate %59, %60 in 0 : vector<1x128xf32>, vector<1x128xf32> -> vector<2x128xf32>
    %c6 = arith.constant 6 : index
    %c0_32 = arith.constant 0 : index
    %c0_33 = arith.constant 0 : index
    %62 = vector.load %arg4[%c6, %c0_32, %c0_33] : memref<8x128x192xf32, #tpu.memory_space<vmem>>, vector<1x128x192xf32>
    %63 = vector.shape_cast %62 : vector<1x128x192xf32> to vector<128x192xf32>
    %cst_34 = arith.constant dense<0.000000e+00> : vector<2x192xf32>
    %64 = tpu.matmul %61, %63, %cst_34 {dimension_numbers = #tpu.dot_dimension_numbers<[1], [0], [0], [1], [0, 0, 1, 1], [], []>} : vector<2x128xf32>, vector<128x192xf32>, vector<2x192xf32> -> vector<2x192xf32>
    %65 = arith.addf %58, %64 : vector<2x192xf32>
    %66 = vector.extract_strided_slice %8 {offsets = [7, 0], sizes = [1, 128], strides = [1, 1]} : vector<8x128xf32> to vector<1x128xf32>
    %67 = vector.extract_strided_slice %15 {offsets = [7, 0], sizes = [1, 128], strides = [1, 1]} : vector<8x128xf32> to vector<1x128xf32>
    %68 = tpu.concatenate %66, %67 in 0 : vector<1x128xf32>, vector<1x128xf32> -> vector<2x128xf32>
    %c7 = arith.constant 7 : index
    %c0_35 = arith.constant 0 : index
    %c0_36 = arith.constant 0 : index
    %69 = vector.load %arg4[%c7, %c0_35, %c0_36] : memref<8x128x192xf32, #tpu.memory_space<vmem>>, vector<1x128x192xf32>
    %70 = vector.shape_cast %69 : vector<1x128x192xf32> to vector<128x192xf32>
    %cst_37 = arith.constant dense<0.000000e+00> : vector<2x192xf32>
    %71 = tpu.matmul %68, %70, %cst_37 {dimension_numbers = #tpu.dot_dimension_numbers<[1], [0], [0], [1], [0, 0, 1, 1], [], []>} : vector<2x128xf32>, vector<128x192xf32>, vector<2x192xf32> -> vector<2x192xf32>
    %72 = arith.addf %65, %71 : vector<2x192xf32>
    %c0_38 = arith.constant 0 : index
    %c0_39 = arith.constant 0 : index
    %73 = vector.load %arg5[%c0_38, %c0_39] : memref<1x192xf32, #tpu.memory_space<vmem>>, vector<1x192xf32>
    %74 = vector.broadcast %73 : vector<1x192xf32> to vector<2x192xf32>
    %75 = arith.addf %72, %74 : vector<2x192xf32>
    %cst_40 = arith.constant 0.000000e+00 : f32
    %76 = vector.broadcast %cst_40 : f32 to vector<2x192xf32>
    %77 = arith.maximumf %75, %76 : vector<2x192xf32>
    %c0_41 = arith.constant 0 : index
    %c0_42 = arith.constant 0 : index
    %78 = vector.load %arg6[%c0_41, %c0_42] : memref<192x128xf32, #tpu.memory_space<vmem>>, vector<192x128xf32>
    %cst_43 = arith.constant dense<0.000000e+00> : vector<2x128xf32>
    %79 = tpu.matmul %77, %78, %cst_43 {dimension_numbers = #tpu.dot_dimension_numbers<[1], [0], [0], [1], [0, 0, 1, 1], [], []>} : vector<2x192xf32>, vector<192x128xf32>, vector<2x128xf32> -> vector<2x128xf32>
    %c0_44 = arith.constant 0 : index
    %c0_45 = arith.constant 0 : index
    %80 = vector.load %arg7[%c0_44, %c0_45] : memref<1x128xf32, #tpu.memory_space<vmem>>, vector<1x128xf32>
    %81 = vector.broadcast %80 : vector<1x128xf32> to vector<2x128xf32>
    %82 = arith.addf %79, %81 : vector<2x128xf32>
    %cst_46 = arith.constant 0.000000e+00 : f32
    %83 = vector.broadcast %cst_46 : f32 to vector<2x128xf32>
    %84 = arith.maximumf %82, %83 : vector<2x128xf32>
    %c0_47 = arith.constant 0 : index
    %c0_48 = arith.constant 0 : index
    %85 = vector.load %arg8[%c0_47, %c0_48] : memref<128x8xf32, #tpu.memory_space<vmem>>, vector<128x8xf32>
    %cst_49 = arith.constant dense<0.000000e+00> : vector<2x8xf32>
    %86 = tpu.matmul %84, %85, %cst_49 {dimension_numbers = #tpu.dot_dimension_numbers<[1], [0], [0], [1], [0, 0, 1, 1], [], []>} : vector<2x128xf32>, vector<128x8xf32>, vector<2x8xf32> -> vector<2x8xf32>
    %c0_50 = arith.constant 0 : index
    %c0_51 = arith.constant 0 : index
    %87 = vector.load %arg9[%c0_50, %c0_51] : memref<1x8xf32, #tpu.memory_space<vmem>>, vector<1x8xf32>
    %88 = vector.broadcast %87 : vector<1x8xf32> to vector<2x8xf32>
    %89 = arith.addf %86, %88 : vector<2x8xf32>
    %c0_52 = arith.constant 0 : index
    %c0_53 = arith.constant 0 : index
    %90 = vector.load %arg10[%c0_52, %c0_53] : memref<2x8xf32, #tpu.memory_space<vmem>>, vector<2x8xf32>
    tpu.vector_store %arg10[%c0_52, %c0_53], %89 {strides = array<i32>} : memref<2x8xf32, #tpu.memory_space<vmem>>, vector<2x8xf32>,
    return
  }
  func.func @transform_0(%arg0: i32) -> (i32, i32, i32) {
    %c0_i32 = arith.constant 0 : i32
    %c0_i32_0 = arith.constant 0 : i32
    %c0_i32_1 = arith.constant 0 : i32
    return %arg0, %c0_i32, %c0_i32_0 : i32, i32, i32
  }
  func.func @transform_1(%arg0: i32) -> (i32, i32) {
    %c0_i32 = arith.constant 0 : i32
    %c0_i32_0 = arith.constant 0 : i32
    %c0_i32_1 = arith.constant 0 : i32
    return %c0_i32, %c0_i32_0 : i32, i32
  }
  func.func @transform_2(%arg0: i32) -> (i32, i32) {
    %c0_i32 = arith.constant 0 : i32
    %c0_i32_0 = arith.constant 0 : i32
    %c0_i32_1 = arith.constant 0 : i32
    return %c0_i32, %c0_i32_0 : i32, i32
  }
  func.func @transform_3(%arg0: i32) -> (i32, i32, i32) {
    %c0_i32 = arith.constant 0 : i32
    %c0_i32_0 = arith.constant 0 : i32
    %c0_i32_1 = arith.constant 0 : i32
    %c0_i32_2 = arith.constant 0 : i32
    return %c0_i32, %c0_i32_0, %c0_i32_1 : i32, i32, i32
  }
  func.func @transform_4(%arg0: i32) -> (i32, i32) {
    %c0_i32 = arith.constant 0 : i32
    %c0_i32_0 = arith.constant 0 : i32
    %c0_i32_1 = arith.constant 0 : i32
    return %c0_i32, %c0_i32_0 : i32, i32
  }
  func.func @transform_5(%arg0: i32) -> (i32, i32) {
    %c0_i32 = arith.constant 0 : i32
    %c0_i32_0 = arith.constant 0 : i32
    %c0_i32_1 = arith.constant 0 : i32
    return %c0_i32, %c0_i32_0 : i32, i32
  }
  func.func @transform_6(%arg0: i32) -> (i32, i32) {
    %c0_i32 = arith.constant 0 : i32
    %c0_i32_0 = arith.constant 0 : i32
    %c0_i32_1 = arith.constant 0 : i32
    return %c0_i32, %c0_i32_0 : i32, i32
  }
  func.func @transform_7(%arg0: i32) -> (i32, i32) {
    %c0_i32 = arith.constant 0 : i32
    %c0_i32_0 = arith.constant 0 : i32
    %c0_i32_1 = arith.constant 0 : i32
    return %c0_i32, %c0_i32_0 : i32, i32
  }
  func.func @transform_8(%arg0: i32) -> (i32, i32) {
    %c0_i32 = arith.constant 0 : i32
    %c0_i32_0 = arith.constant 0 : i32
    %c0_i32_1 = arith.constant 0 : i32
    return %c0_i32, %c0_i32_0 : i32, i32
  }
  func.func @transform_9(%arg0: i32) -> (i32, i32) {
    %c0_i32 = arith.constant 0 : i32
    %c0_i32_0 = arith.constant 0 : i32
    return %arg0, %c0_i32 : i32, i32
  }
}

</mosaic_0001>

<bundles_post_ra>
// kernel: squeeze.71
= control target key start
LH: loop header
LB: loop body
LE: loop exit
PB: predicated region body
PF: predicated region fallthrough
CT: control target
= control target key end

     0   :  { %s7_s6 = smov 3  ;;  %s21_s9 = smov 3  ;;  %vm4_vm0 = vcmask 113664   ;;  %vm11_vm1 = vcmask 1032064   ;;  %vm18_vm2 = vcmask 917264   ;;  %vm25_vm3 = vcmask 802464   ;;  %s141_s0 = inlined_call_operand.vmem [shape: f32[2,9,14], index: 0, kind: input, shape index: {}]   ;;  %s142_s1 = inlined_call_operand.vmem [shape: f32[2,1,126], index: 1, kind: output, shape index: {}]  }
   0x1   :  { %v73_v0 = vld [vmem:[%s141_s0 + $0x8] ss:$16 sm:%s7_s6]   ;;  %s90_s10 = smov 112   ;;  %v75_v1 = vld [vmem:[%s141_s0 + $0x6] ss:$16 sm:%s21_s9]   ;;  %s14_s13 = smov 3 }
   0x2   :  { %9 = vrot.lane.b32.xlu0 %v73_v0, %s90_s10  ;;  %s91_s14 = smov 84   ;;  %v74_v2 = vld [vmem:[%s141_s0 + $0x7] ss:$16 sm:%s14_s13]   ;;  %s28_s17 = smov 3  ;;  %vm32_vm4 = vcmask 687664   ;;  %vm39_vm5 = vcmask 572864  }
   0x3   :  { %23 = vrot.lane.b32.xlu1 %v75_v1, %s91_s14  ;;  %v76_v3 = vld [vmem:[%s141_s0 + $0x5] ss:$16 sm:%s28_s17]   ;;  %s35_s20 = smov 3  ;;  %s42_s21 = smov 3  ;;  %vm46_vm6 = vcmask 458064   ;;  %vm53_vm7 = vcmask 343264  }
   0x4   :  { %s92_s22 = smov 98   ;;  %s93_s23 = smov 70   ;;  %v77_v4 = vld [vmem:[%s141_s0 + $0x4] ss:$16 sm:%s35_s20]   ;;  %v78_v5 = vld [vmem:[%s141_s0 + $0x3] ss:$16 sm:%s42_s21]  }
   0x5   :  { %s49_s28 = smov 3  ;;  %s2_s29 = smov 3  ;;  %vm60_vm8 = vcmask 228464  }
   0x6   :  { %16 = vrot.lane.b32.xlu0 %v74_v2, %s92_s22  ;;  %s56_s30 = smov 3  ;;  %v3_v6 = vld [vmem:[%s141_s0] ss:$16 sm:%s2_s29]   ;;  %s94_s4 = smov 56  }
   0x7   :  { %30 = vrot.lane.b32.xlu1 %v76_v3, %s93_s23  ;;  %5 = vst.msk [vmem:[#allocation0] ss:$8 sm:$0x3] %vm4_vm0, %v3_v6   ;;  %s95_s5 = smov 42   ;;  %v79_v7 = vld [vmem:[%s141_s0 + $0x2] ss:$16 sm:%s49_s28]  }
   0x8   :  { %v80_v8 = vld [vmem:[%s141_s0 + $0x1] ss:$16 sm:%s56_s30]   ;;  %s96_s0 = smov 28   ;;  %s97_s10 = smov 14  }
   0xa   :  { %37 = vrot.lane.b32.xlu0 %v77_v4, %s94_s4 }
   0xb   :  { %44 = vrot.lane.b32.xlu1 %v78_v5, %s95_s5 }
   0xe   :  { %51 = vrot.lane.b32.xlu0 %v79_v7, %s96_s0 }
   0xf   :  { %58 = vrot.lane.b32.xlu1 %v80_v8, %s97_s10 }
  0x74   :  { %v10_v9 = vpop.permute.xlu0 %9  }
  0x75   :  { %12 = vst.msk [vmem:[#allocation0] ss:$8 sm:$0x3] %vm11_vm1, %v10_v9   ;;  %v24_v10 = vpop.permute.xlu1 %23  }
  0x78   :  { %v17_v11 = vpop.permute.xlu0 %16  }
  0x79   :  { %19 = vst.msk [vmem:[#allocation0] ss:$8 sm:$0x3] %vm18_vm2, %v17_v11   ;;  %v31_v12 = vpop.permute.xlu1 %30  }
  0x7a   :  { %26 = vst.msk [vmem:[#allocation0] ss:$8 sm:$0x3] %vm25_vm3, %v24_v10  }
  0x7b   :  { %33 = vst.msk [vmem:[#allocation0] ss:$8 sm:$0x3] %vm32_vm4, %v31_v12  }
  0x7c   :  { %v38_v13 = vpop.permute.xlu0 %37  }
  0x7d   :  { %40 = vst.msk [vmem:[#allocation0] ss:$8 sm:$0x3] %vm39_vm5, %v38_v13   ;;  %v45_v14 = vpop.permute.xlu1 %44  }
  0x7e   :  { %47 = vst.msk [vmem:[#allocation0] ss:$8 sm:$0x3] %vm46_vm6, %v45_v14  }
  0x80   :  { %v52_v15 = vpop.permute.xlu0 %51  }
  0x81   :  { %54 = vst.msk [vmem:[#allocation0] ss:$8 sm:$0x3] %vm53_vm7, %v52_v15   ;;  %v59_v16 = vpop.permute.xlu1 %58  }
  0x82   :  { %61 = vst.msk [vmem:[#allocation0] ss:$8 sm:$0x3] %vm60_vm8, %v59_v16  }
  0x89   :  { %v65_v17 = vld [vmem:[#allocation0] sm:$0x1]  ;;  %v69_v18 = vld [vmem:[#allocation0 + $0x8] sm:$0x1] }
  0x8a   :  { %67 = vst [vmem:[%s142_s1] sm:$0x1] %v65_v17  ;;  %81 = vst [vmem:[%s142_s1 + $0x1] sm:$0x1] %v69_v18 }

// kernel: net_forward.1
= control target key start
LH: loop header
LB: loop body
LE: loop exit
PB: predicated region body
PF: predicated region fallthrough
CT: control target
= control target key end

     0   :  { %v2015_v3 = vmov 0.0|0.0   ;;  %v2016_v6 = vmov 0.0   ;;  %vm2017_vm0 = vmmov 0   ;;  %v2018_v8 = vmov 0   ;;  %s3085_s0 = inlined_call_operand.vmem [shape: f32[2,36,128], index: 0, kind: input, shape index: {}]   ;;  %s3086_s1 = inlined_call_operand.vmem [shape: f32[8,36], index: 1, kind: input, shape index: {}]   ;;  %s3087_s2 = inlined_call_operand.vmem [shape: f32[8,1], index: 2, kind: input, shape index: {}]   ;;  %s3088_s3 = inlined_call_operand.vmem [shape: f32[8,128,192], index: 3, kind: input, shape index: {}]   ;;  %s3089_s4 = inlined_call_operand.vmem [shape: f32[1,192], index: 4, kind: input, shape index: {}]   ;;  %s3090_s5 = inlined_call_operand.vmem [shape: f32[192,128], index: 5, kind: input, shape index: {}]   ;;  %s3091_s6 = inlined_call_operand.vmem [shape: f32[1,128], index: 6, kind: input, shape index: {}]   ;;  %s3092_s7 = inlined_call_operand.vmem [shape: f32[128,8], index: 7, kind: input, shape index: {}]   ;;  %s3093_s8 = inlined_call_operand.vmem [shape: f32[1,8], index: 8, kind: input, shape index: {}]   ;;  %s3094_s9 = inlined_call_operand.hbm [shape: f32[2,8], index: 9, kind: output, shape index: {}]  }
   0x1   :  { %v35_v0 = vld [vmem:[%s3085_s0] sm:$0xff]  ;;  %v36_v1 = vld [vmem:[%s3085_s0 + $0x8] sm:$0xff]  ;;  %v37_v2 = vld [vmem:[%s3085_s0 + $0x10] sm:$0xff]  ;;  %1643 = vmatprep.subr.bf16.mxu0 %v2015_v3  ;;  %342 = vmatprep.mubr.f32.mxu1 %v2016_v6  ;;  %vm49_vm1 = vcmask 1043456   ;;  %vm45_vm2 = vcmask 293888  }
   0x2   :  { %v1644_v4 = vpack.c.bf16 %v36_v1, %v35_v0  ;;  %v38_v5 = vld [vmem:[%s3085_s0 + $0x18] sm:$0xff]  ;;  %1592 = vmatprep.mubr.msk.f32.mxu0 %vm2017_vm0, %v2016_v6  ;;  %1990 = vset.pattern.permute.xlu0 %v2018_v8  ;;  %v34_v9 = vld [vmem:[%s3087_s2] sm:$0xff]  ;;  %v1327_v10 = vld [vmem:[%s3088_s3 + $0x108] sm:$0xff] }
   0x3   :  { %v1647_v7 = vpack.c.bf16 %v38_v5, %v37_v2  ;;  %42 = vperm.xlu0 %1990, %v34_v9   ;;  %v1329_v11 = vld [vmem:[%s3088_s3 + $0x118] sm:$0xff]  ;;  %v1326_v12 = vld [vmem:[%s3088_s3 + $0x100] sm:$0xff]  ;;  %v1328_v14 = vld [vmem:[%s3088_s3 + $0x110] sm:$0xff] }
   0x4   :  { %1645 = vmatpush3.bf16.msra.mxu0 %v1644_v4  ;;  %v1655_v13 = vpack.c.bf16 %v1329_v11, %v1327_v10  ;;  %v1319_v15 = vld [vmem:[%s3085_s0 + $0x28] sm:$0xff]  ;;  %v1320_v16 = vld [vmem:[%s3085_s0 + $0x30] sm:$0xff]  ;;  %v1657_v17 = vpack.c.bf16 %v1328_v14, %v1326_v12  ;;  %v1333_v19 = vld [vmem:[%s3088_s3 + $0x138] sm:$0xff] }
   0x5   :  { %1646 = vmatprep.subr.bf16.mxu0 %v2015_v3  ;;  %v1331_v18 = vld [vmem:[%s3088_s3 + $0x128] sm:$0xff]  ;;  %v1330_v20 = vld [vmem:[%s3088_s3 + $0x120] sm:$0xff]  ;;  %v1332_v21 = vld [vmem:[%s3088_s3 + $0x130] sm:$0xff]  ;;  %v1650_v25 = vpack.c.bf16 %v1320_v16, %v1319_v15 }
   0x6   :  { %1656 = vmatprep.subr.bf16.mxu1 %v1655_v13  ;;  %v39_v22 = vld [vmem:[%s3085_s0 + $0x20] sm:$0xf]  ;;  %v1659_v23 = vpack.c.bf16 %v1333_v19, %v1331_v18  ;;  %v1335_v26 = vld [vmem:[%s3088_s3 + $0x148] sm:$0xff]  ;;  %v1337_v27 = vld [vmem:[%s3088_s3 + $0x158] sm:$0xff]  ;;  %v1661_v30 = vpack.c.bf16 %v1332_v21, %v1330_v20 }
   0x7   :  { %1658 = vmatpush1.bf16.msra.mxu1 %v1657_v17  ;;  %v33_v24 = vld [vmem:[%s3086_s1] sm:$0xff]  ;;  %v1321_v28 = vld [vmem:[%s3085_s0 + $0x38] sm:$0xff]  ;;  %v1663_v31 = vpack.c.bf16 %v1337_v27, %v1335_v26  ;;  %v1336_v33 = vld [vmem:[%s3088_s3 + $0x150] sm:$0xff] }
   0x8   :  { %1648 = vmatpush3.bf16.msra.mxu0 %v1647_v7  ;;  %v1322_v29 = vld [vmem:[%s3085_s0 + $0x40] sm:$0xff]  ;;  %1660 = vmatprep.subr.bf16.mxu1 %v1659_v23  ;;  %v1339_v34 = vld [vmem:[%s3088_s3 + $0x168] sm:$0xff]  ;;  %v1341_v35 = vld [vmem:[%s3088_s3 + $0x178] sm:$0xff] }
   0x9   :  { %1590 = vmatprep.subr.mxu0 %v2016_v6  ;;  %v1334_v32 = vld [vmem:[%s3088_s3 + $0x140] sm:$0xff]  ;;  %v1653_v36 = vpack.c.bf16 %v1322_v29, %v1321_v28  ;;  %v1391_v37 = vld [vmem:[%s3088_s3 + $0x308] sm:$0xff]  ;;  %v1393_v38 = vld [vmem:[%s3088_s3 + $0x318] sm:$0xff]  ;;  %v1667_v42 = vpack.c.bf16 %v1341_v35, %v1339_v34 }
   0xa   :  { %v1665_v39 = vpack.c.bf16 %v1336_v33, %v1334_v32  ;;  %v1390_v40 = vld [vmem:[%s3088_s3 + $0x300] sm:$0xff]  ;;  %v1392_v41 = vld [vmem:[%s3088_s3 + $0x310] sm:$0xff] }
   0xb   :  { %1662 = vmatpush1.bf16.msra.mxu1 %v1661_v30 }
   0xc   :  { %1591 = vmatpush3.msk.msra.mxu0 %vm49_vm1, %v39_v22  ;;  %1664 = vmatprep.subr.bf16.mxu1 %v1663_v31 }
   0xd   :  { %1593 = vmatmul.mubr.msk.f32.vlgmr.msra.gmra.mrb[0].mxu0 %vm45_vm2, %v33_v24  ;;  %1649 = vmatprep.subr.bf16.mxu0 %v2015_v3 }
   0xe   :  { %1651 = vmatpush3.bf16.msra.mxu0 %v1650_v25  ;;  %1605 = vmatprep.mubr.msk.f32.mxu0 %vm2017_vm0, %v2016_v6 }
   0xf   :  { %1652 = vmatprep.subr.bf16.mxu0 %v2015_v3 }
  0x10   :  { %14 = vsyncpa [#allocation3], 0  ;;  %v1395_v43 = vld [vmem:[%s3088_s3 + $0x328] sm:$0xff]  ;;  %v1338_v44 = vld [vmem:[%s3088_s3 + $0x160] sm:$0xff]  ;;  %v1751_v50 = vpack.c.bf16 %v1393_v38, %v1391_v37  ;;  %1666 = vmatpush1.bf16.msra.mxu1 %v1665_v39  ;;  %v1753_v51 = vpack.c.bf16 %v1392_v41, %v1390_v40  ;;  %vm207_vm3 = vcmask 1040384   ;;  %vm1133_vm4 = vcmask 523264  }
  0x11   :  { %v1340_v45 = vld [vmem:[%s3088_s3 + $0x170] sm:$0xff]  ;;  %v1397_v46 = vld [vmem:[%s3088_s3 + $0x338] sm:$0xff]  ;;  %v1343_v47 = vld [vmem:[%s3088_s3 + $0x188] sm:$0xff]  ;;  %1668 = vmatprep.subr.bf16.mxu1 %v1667_v42  ;;  %s2019_s26 = smov [#allocation2]   ;;  %vm1301_vm5 = vcmask 58368  }
  0x12   :  { %1654 = vmatpush3.bf16.msra.mxu0 %v1653_v36  ;;  %v1345_v48 = vld [vmem:[%s3088_s3 + $0x198] sm:$0xff]  ;;  %v1323_v49 = vld [vmem:[%s3085_s0 + $0x48] sm:$0xf]  ;;  %v1669_v52 = vpack.c.bf16 %v1340_v45, %v1338_v44  ;;  %v1755_v53 = vpack.c.bf16 %v1397_v46, %v1395_v43  ;;  %v1394_v54 = vld [vmem:[%s3088_s3 + $0x320] sm:$0xff]  ;;  %s1309_s2 = sshll.u32 %s2019_s26, 4  ;;  %s1310_s2 = int_to_ptr.vmem [resolvable:$true] %s1309_s2 }
  0x13   :  { %1603 = vmatprep.subr.mxu0 %v2016_v6  ;;  %v1396_v55 = vld [vmem:[%s3088_s3 + $0x330] sm:$0xff]  ;;  %v1671_v56 = vpack.c.bf16 %v1345_v48, %v1343_v47  ;;  %v1399_v57 = vld [vmem:[%s3088_s3 + $0x348] sm:$0xff]  ;;  %v1401_v58 = vld [vmem:[%s3088_s3 + $0x358] sm:$0xff]  ;;  %p1996_p1 = scmp.lt.s32.totalorder %s1310_s2, %s1310_s2 }
  0x14   :  { %v1757_v59 = vpack.c.bf16 %v1396_v55, %v1394_v54  ;;  %1670 = vmatpush1.bf16.msra.mxu1 %v1669_v52  ;;  %v1759_v60 = vpack.c.bf16 %v1401_v58, %v1399_v57  ;;  %v1398_v61 = vld [vmem:[%s3088_s3 + $0x340] sm:$0xff]  ;;  %v1400_v62 = vld [vmem:[%s3088_s3 + $0x350] sm:$0xff]  ;;  %v1403_v63 = vld [vmem:[%s3088_s3 + $0x368] sm:$0xff] }
  0x15   :  { %1672 = vmatprep.subr.bf16.mxu1 %v1671_v56  ;;  %v1405_v0 = vld [vmem:[%s3088_s3 + $0x378] sm:$0xff]  ;;  %v1761_v1 = vpack.c.bf16 %v1400_v62, %v1398_v61  ;;  %v1402_v4 = vld [vmem:[%s3088_s3 + $0x360] sm:$0xff]  ;;  %v1404_v5 = vld [vmem:[%s3088_s3 + $0x370] sm:$0xff] }
  0x16   :  { %1604 = vmatpush3.msk.msra.mxu0 %vm49_vm1, %v1323_v49  ;;  %v1763_v2 = vpack.c.bf16 %v1405_v0, %v1403_v63  ;;  %v1765_v7 = vpack.c.bf16 %v1404_v5, %v1402_v4  ;;  %v1342_v8 = vld [vmem:[%s3088_s3 + $0x180] sm:$0xff]  ;;  %v1344_v9 = vld [vmem:[%s3088_s3 + $0x190] sm:$0xff]  ;;  %v1407_v11 = vld [vmem:[%s3088_s3 + $0x388] sm:$0xff] }
  0x17   :  { %1606 = vmatmul.mubr.msk.f32.vlgmr.msra.gmra.mrb[2].mxu0 %vm45_vm2, %v33_v24  ;;  %1752 = vmatprep.subr.bf16.mxu0 %v1751_v50  ;;  %v1673_v10 = vpack.c.bf16 %v1344_v9, %v1342_v8  ;;  %v1409_v12 = vld [vmem:[%s3088_s3 + $0x398] sm:$0xff]  ;;  %v1406_v14 = vld [vmem:[%s3088_s3 + $0x380] sm:$0xff]  ;;  %v1408_v15 = vld [vmem:[%s3088_s3 + $0x390] sm:$0xff] }
  0x18   :  { %1754 = vmatpush1.bf16.msra.mxu0 %v1753_v51  ;;  %633 = vmatprep.mubr.f32.mxu0 %v2016_v6  ;;  %v1767_v13 = vpack.c.bf16 %v1409_v12, %v1407_v11  ;;  %v1769_v16 = vpack.c.bf16 %v1408_v15, %v1406_v14  ;;  %v1347_v17 = vld [vmem:[%s3088_s3 + $0x1a8] sm:$0xff]  ;;  %v1349_v18 = vld [vmem:[%s3088_s3 + $0x1b8] sm:$0xff]  ;;  %v1346_v20 = vld [vmem:[%s3088_s3 + $0x1a0] sm:$0xff] }
  0x19   :  { %1756 = vmatprep.subr.bf16.mxu0 %v1755_v53  ;;  %1674 = vmatpush1.bf16.msra.mxu1 %v1673_v10  ;;  %v1675_v19 = vpack.c.bf16 %v1349_v18, %v1347_v17  ;;  %v1348_v21 = vld [vmem:[%s3088_s3 + $0x1b0] sm:$0xff]  ;;  %v1411_v23 = vld [vmem:[%s3088_s3 + $0x3a8] sm:$0xff]  ;;  %v1413_v24 = vld [vmem:[%s3088_s3 + $0x3b8] sm:$0xff] }
  0x1a   :  { %v1677_v22 = vpack.c.bf16 %v1348_v21, %v1346_v20  ;;  %v1771_v25 = vpack.c.bf16 %v1413_v24, %v1411_v23  ;;  %v1410_v26 = vld [vmem:[%s3088_s3 + $0x3a0] sm:$0xff]  ;;  %v1412_v27 = vld [vmem:[%s3088_s3 + $0x3b0] sm:$0xff]  ;;  %v1351_v28 = vld [vmem:[%s3088_s3 + $0x1c8] sm:$0xff] }
  0x1b   :  { %1676 = vmatprep.subr.bf16.mxu1 %v1675_v19  ;;  %v1773_v29 = vpack.c.bf16 %v1412_v27, %v1410_v26  ;;  %v1353_v30 = vld [vmem:[%s3088_s3 + $0x1d8] sm:$0xff]  ;;  %v1350_v31 = vld [vmem:[%s3088_s3 + $0x1c0] sm:$0xff]  ;;  %v1352_v32 = vld [vmem:[%s3088_s3 + $0x1d0] sm:$0xff] }
  0x1c   :  { %1758 = vmatpush1.bf16.msra.mxu0 %v1757_v59  ;;  %v1679_v33 = vpack.c.bf16 %v1353_v30, %v1351_v28  ;;  %v1681_v34 = vpack.c.bf16 %v1352_v32, %v1350_v31  ;;  %v1415_v35 = vld [vmem:[%s3088_s3 + $0x3c8] sm:$0xff]  ;;  %v1417_v36 = vld [vmem:[%s3088_s3 + $0x3d8] sm:$0xff]  ;;  %v1414_v38 = vld [vmem:[%s3088_s3 + $0x3c0] sm:$0xff] }
  0x1d   :  { %1760 = vmatprep.subr.bf16.mxu0 %v1759_v60  ;;  %1678 = vmatpush1.bf16.msra.mxu1 %v1677_v22  ;;  %v1775_v37 = vpack.c.bf16 %v1417_v36, %v1415_v35  ;;  %v1416_v39 = vld [vmem:[%s3088_s3 + $0x3d0] sm:$0xff]  ;;  %v1355_v41 = vld [vmem:[%s3088_s3 + $0x1e8] sm:$0xff]  ;;  %v1357_v42 = vld [vmem:[%s3088_s3 + $0x1f8] sm:$0xff] }
  0x1e   :  { %1680 = vmatprep.subr.bf16.mxu1 %v1679_v33  ;;  %v1777_v40 = vpack.c.bf16 %v1416_v39, %v1414_v38  ;;  %v1683_v43 = vpack.c.bf16 %v1357_v42, %v1355_v41  ;;  %v1354_v44 = vld [vmem:[%s3088_s3 + $0x1e0] sm:$0xff]  ;;  %v1356_v45 = vld [vmem:[%s3088_s3 + $0x1f0] sm:$0xff]  ;;  %v1419_v47 = vld [vmem:[%s3088_s3 + $0x3e8] sm:$0xff] }
  0x1f   :  { %v1685_v46 = vpack.c.bf16 %v1356_v45, %v1354_v44  ;;  %v1421_v48 = vld [vmem:[%s3088_s3 + $0x3f8] sm:$0xff]  ;;  %v1418_v50 = vld [vmem:[%s3088_s3 + $0x3e0] sm:$0xff]  ;;  %v1420_v51 = vld [vmem:[%s3088_s3 + $0x3f0] sm:$0xff] }
  0x20   :  { %1762 = vmatpush1.bf16.msra.mxu0 %v1761_v1  ;;  %v1779_v49 = vpack.c.bf16 %v1421_v48, %v1419_v47  ;;  %v1781_v52 = vpack.c.bf16 %v1420_v51, %v1418_v50  ;;  %v210_v53 = vld [vmem:[%s3088_s3 + $0x8] sm:$0xff]  ;;  %v212_v54 = vld [vmem:[%s3088_s3 + $0x18] sm:$0xff]  ;;  %v209_v63 = vld [vmem:[%s3088_s3] sm:$0xff] }
  0x21   :  { %1764 = vmatprep.subr.bf16.mxu0 %v1763_v2  ;;  %1682 = vmatpush1.bf16.msra.mxu1 %v1681_v34  ;;  %v1687_v55 = vpack.c.bf16 %v212_v54, %v210_v53  ;;  %v1423_v56 = vld [vmem:[%s3088_s3 + $0x408] sm:$0xff]  ;;  %v1425_v57 = vld [vmem:[%s3088_s3 + $0x418] sm:$0xff]  ;;  %v211_v0 = vld [vmem:[%s3088_s3 + $0x10] sm:$0xff] }
  0x22   :  { %1684 = vmatprep.subr.bf16.mxu1 %v1683_v43  ;;  %v1783_v58 = vpack.c.bf16 %v1425_v57, %v1423_v56  ;;  %v1422_v1 = vld [vmem:[%s3088_s3 + $0x400] sm:$0xff]  ;;  %v1424_v2 = vld [vmem:[%s3088_s3 + $0x410] sm:$0xff]  ;;  %v214_v4 = vld [vmem:[%s3088_s3 + $0x28] sm:$0xff]  ;;  %v1689_v17 = vpack.c.bf16 %v211_v0, %v209_v63 }
  0x23   :  { %v216_v5 = vld [vmem:[%s3088_s3 + $0x38] sm:$0xff]  ;;  %v215_v9 = vld [vmem:[%s3088_s3 + $0x30] sm:$0xff]  ;;  %v1427_v10 = vld [vmem:[%s3088_s3 + $0x428] sm:$0xff]  ;;  %v1785_v18 = vpack.c.bf16 %v1424_v2, %v1422_v1 }
  0x24   :  { %1766 = vmatpush1.bf16.msra.mxu0 %v1765_v7  ;;  %v213_v7 = vld [vmem:[%s3088_s3 + $0x20] sm:$0xff]  ;;  %v1429_v11 = vld [vmem:[%s3088_s3 + $0x438] sm:$0xff]  ;;  %v1691_v19 = vpack.c.bf16 %v216_v5, %v214_v4  ;;  %v1428_v35 = vld [vmem:[%s3088_s3 + $0x430] sm:$0xff] }
  0x25   :  { %1768 = vmatprep.subr.bf16.mxu0 %v1767_v13  ;;  %1686 = vmatpush1.bf16.msra.mxu1 %v1685_v46  ;;  %v218_v13 = vld [vmem:[%s3088_s3 + $0x48] sm:$0xff]  ;;  %v220_v14 = vld [vmem:[%s3088_s3 + $0x58] sm:$0xff]  ;;  %v1693_v20 = vpack.c.bf16 %v215_v9, %v213_v7  ;;  %v1787_v21 = vpack.c.bf16 %v1429_v11, %v1427_v10  ;;  %v1426_v34 = vld [vmem:[%s3088_s3 + $0x420] sm:$0xff] }
  0x26   :  { %1688 = vmatprep.subr.bf16.mxu1 %v1687_v55  ;;  %v1431_v41 = vld [vmem:[%s3088_s3 + $0x448] sm:$0xff]  ;;  %v1433_v42 = vld [vmem:[%s3088_s3 + $0x458] sm:$0xff]  ;;  %v217_v46 = vld [vmem:[%s3088_s3 + $0x40] sm:$0xff]  ;;  %v1789_v51 = vpack.c.bf16 %v1428_v35, %v1426_v34 }
  0x27   :  { %v219_v47 = vld [vmem:[%s3088_s3 + $0x50] sm:$0xff]  ;;  %v224_v53 = vld [vmem:[%s3088_s3 + $0x78] sm:$0xff]  ;;  %v1791_v55 = vpack.c.bf16 %v1433_v42, %v1431_v41  ;;  %v1430_v56 = vld [vmem:[%s3088_s3 + $0x440] sm:$0xff] }
  0x28   :  { %1770 = vmatpush1.bf16.msra.mxu0 %v1769_v16  ;;  %v1432_v57 = vld [vmem:[%s3088_s3 + $0x450] sm:$0xff]  ;;  %v226_v1 = vld [vmem:[%s3088_s3 + $0x88] sm:$0xff]  ;;  %v228_v2 = vld [vmem:[%s3088_s3 + $0x98] sm:$0xff] }
  0x29   :  { %1772 = vmatprep.subr.bf16.mxu0 %v1771_v25  ;;  %v1695_v25 = vpack.c.bf16 %v220_v14, %v218_v13  ;;  %v223_v63 = vld [vmem:[%s3088_s3 + $0x70] sm:$0xff]  ;;  %v1793_v0 = vpack.c.bf16 %v1432_v57, %v1430_v56  ;;  %v1434_v5 = vld [vmem:[%s3088_s3 + $0x460] sm:$0xff]  ;;  %v1439_v9 = vld [vmem:[%s3088_s3 + $0x488] sm:$0xff]  ;;  %v1703_v11 = vpack.c.bf16 %v228_v2, %v226_v1 }
  0x2a   :  { %v1436_v7 = vld [vmem:[%s3088_s3 + $0x470] sm:$0xff]  ;;  %v1441_v10 = vld [vmem:[%s3088_s3 + $0x498] sm:$0xff]  ;;  %v1446_v42 = vld [vmem:[%s3088_s3 + $0x4c0] sm:$0xff] }
  0x2b   :  { %v227_v13 = vld [vmem:[%s3088_s3 + $0x90] sm:$0xff]  ;;  %v1797_v14 = vpack.c.bf16 %v1436_v7, %v1434_v5  ;;  %v1449_v34 = vld [vmem:[%s3088_s3 + $0x4d8] sm:$0xff]  ;;  %v1359_v57 = vld [vmem:[%s3088_s3 + $0x208] sm:$0xff] }
  0x2c   :  { %1774 = vmatpush1.bf16.msra.mxu0 %v1773_v29  ;;  %v1358_v2 = vld [vmem:[%s3088_s3 + $0x200] sm:$0xff]  ;;  %v1363_v7 = vld [vmem:[%s3088_s3 + $0x228] sm:$0xff] }
  0x2d   :  { %1776 = vmatprep.subr.bf16.mxu0 %v1775_v37 }
  0x30   :  { %1778 = vmatpush1.bf16.msra.mxu0 %v1777_v40 }
  0x31   :  { %1780 = vmatprep.subr.bf16.mxu0 %v1779_v49 }
  0x34   :  { %1782 = vmatpush1.bf16.msra.mxu0 %v1781_v52  ;;  %v222_v52 = vld [vmem:[%s3088_s3 + $0x68] sm:$0xff] }
  0x35   :  { %1784 = vmatprep.subr.bf16.mxu0 %v1783_v58  ;;  %v1697_v58 = vpack.c.bf16 %v219_v47, %v217_v46  ;;  %v1451_v47 = vld [vmem:[%s3088_s3 + $0x4e8] sm:$0xff] }
  0x82   :  { %v43_v61 = vpop.permute.xlu0 %42 }
  0xe0   :  { %v119_v59 = vpop.f32.mrb[0].mxu0 }
  0xe1   :  { %v1594_v60 = vpop.f32.mrb[1].mxu0  ;;  %v120_v62 = vadd.f32 %v119_v59, %v43_v61  ;;  %v1435_v59 = vld [vmem:[%s3088_s3 + $0x468] sm:$0xff] }
  0xe2   :  { %v1437_v60 = vld [vmem:[%s3088_s3 + $0x478] sm:$0xff] }
  0xe3   :  { %v123_v8 = vmax.f32 %v120_v62, 0.0  ;;  %v221_v62 = vld [vmem:[%s3088_s3 + $0x60] sm:$0xff]  ;;  %v1795_v4 = vpack.c.bf16 %v1437_v60, %v1435_v59 }
  0xe4   :  { %v1450_v60 = vld [vmem:[%s3088_s3 + $0x4e0] sm:$0xff] }
  0xe5   :  { %v242_v23 = vrot.slane %v123_v8, 1  ;;  %v531_v24 = vrot.slane %v123_v8, 3  ;;  %v642_v26 = vrot.slane %v123_v8, 4  ;;  %v420_v27 = vrot.slane %v123_v8, 2 }
  0xe6   :  { %v753_v28 = vrot.slane %v123_v8, 5  ;;  %v864_v29 = vrot.slane %v123_v8, 6  ;;  %v975_v45 = vrot.slane %v123_v8, 7 }
  0xea   :  { %v199_v12 = vpop.f32.mrb[2].mxu0 }
  0xeb   :  { %v200_v15 = vadd.f32 %v199_v12, %v43_v61  ;;  %v1607_v16 = vpop.f32.mrb[3].mxu0  ;;  %v1699_v61 = vpack.c.bf16 %v224_v53, %v222_v52  ;;  %v225_v12 = vld [vmem:[%s3088_s3 + $0x80] sm:$0xff] }
  0xec   :  { %v232_v16 = vld [vmem:[%s3088_s3 + $0xb8] sm:$0xff]  ;;  %v237_v53 = vld [vmem:[%s3088_s3 + $0xe0] sm:$0xff] }
  0xed   :  { %v203_v22 = vmax.f32 %v200_v15, 0.0  ;;  %v230_v15 = vld [vmem:[%s3088_s3 + $0xa8] sm:$0xff] }
  0xef   :  { %v244_v30 = vsel %vm207_vm3, %v242_v23, %v203_v22  ;;  %v533_v31 = vrot.slane %v203_v22, 2  ;;  %v205_v32 = vrot.slane %v203_v22, 7  ;;  %v644_v33 = vrot.slane %v203_v22, 3 }
  0xf0   :  { %343 = vmatmul.mubr.f32.vlgmr.msra.gmra.mrb[0].mxu1 %v244_v30  ;;  %v422_v36 = vrot.slane %v203_v22, 1  ;;  %v755_v37 = vrot.slane %v203_v22, 4  ;;  %v866_v38 = vrot.slane %v203_v22, 5  ;;  %v977_v39 = vrot.slane %v203_v22, 6  ;;  %v1445_v22 = vld [vmem:[%s3088_s3 + $0x4b8] sm:$0xff]  ;;  %v1442_v30 = vld [vmem:[%s3088_s3 + $0x4a0] sm:$0xff] }
  0xf1   :  { %1690 = vmatpush1.bf16.msra.mxu1 %v1689_v17  ;;  %v535_v40 = vsel %vm207_vm3, %v531_v24, %v533_v31  ;;  %413 = vmatprep.mubr.f32.mxu1 %v2016_v6  ;;  %v2378_v43 = vsel %vm207_vm3, %v123_v8, %v205_v32  ;;  %v2381_v44 = vsel %vm207_vm3, %v642_v26, %v644_v33  ;;  %v229_v24 = vld [vmem:[%s3088_s3 + $0xa0] sm:$0xff]  ;;  %v1444_v31 = vld [vmem:[%s3088_s3 + $0x4b0] sm:$0xff]  ;;  %v1447_v33 = vld [vmem:[%s3088_s3 + $0x4c8] sm:$0xff] }
  0xf2   :  { %634 = vmatmul.mubr.f32.vlgmr.msra.gmra.mrb[4].mxu0 %v535_v40  ;;  %1692 = vmatprep.subr.bf16.mxu1 %v1691_v19  ;;  %v2390_v48 = vsel %vm207_vm3, %v420_v27, %v422_v36  ;;  %v2393_v49 = vsel %vm207_vm3, %v753_v28, %v755_v37  ;;  %v2396_v50 = vsel %vm207_vm3, %v864_v29, %v866_v38  ;;  %v1440_v19 = vld [vmem:[%s3088_s3 + $0x490] sm:$0xff]  ;;  %v234_v27 = vld [vmem:[%s3088_s3 + $0xc8] sm:$0xff]  ;;  %v236_v28 = vld [vmem:[%s3088_s3 + $0xd8] sm:$0xff] }
  0xf3   :  { %1786 = vmatpush1.bf16.msra.mxu0 %v1785_v18  ;;  %744 = vmatprep.mubr.f32.mxu0 %v2016_v6  ;;  %v2406_v54 = vsel %vm207_vm3, %v975_v45, %v977_v39  ;;  %v1701_v8 = vpack.c.bf16 %v223_v63, %v221_v62  ;;  %v1799_v17 = vpack.c.bf16 %v1441_v10, %v1439_v9  ;;  %v1438_v18 = vld [vmem:[%s3088_s3 + $0x480] sm:$0xff]  ;;  %v235_v37 = vld [vmem:[%s3088_s3 + $0xd0] sm:$0xff]  ;;  %v238_v39 = vld [vmem:[%s3088_s3 + $0xe8] sm:$0xff] }
  0xf4   :  { %1788 = vmatprep.subr.bf16.mxu0 %v1787_v21  ;;  %v1443_v21 = vld [vmem:[%s3088_s3 + $0x4a8] sm:$0xff]  ;;  %v1707_v23 = vpack.c.bf16 %v232_v16, %v230_v15  ;;  %v1801_v26 = vpack.c.bf16 %v1440_v19, %v1438_v18  ;;  %v1711_v35 = vpack.c.bf16 %v236_v28, %v234_v27  ;;  %v233_v36 = vld [vmem:[%s3088_s3 + $0xc0] sm:$0xff]  ;;  %v1805_v38 = vpack.c.bf16 %v1444_v31, %v1442_v30  ;;  %v240_v40 = vld [vmem:[%s3088_s3 + $0xf8] sm:$0xff] }
  0xf5   :  { %1694 = vmatpush1.bf16.msra.mxu1 %v1693_v20  ;;  %v1705_v20 = vpack.c.bf16 %v227_v13, %v225_v12  ;;  %v1803_v29 = vpack.c.bf16 %v1445_v22, %v1443_v21  ;;  %v1807_v41 = vpack.c.bf16 %v1449_v34, %v1447_v33  ;;  %v1448_v45 = vld [vmem:[%s3088_s3 + $0x4d0] sm:$0xff]  ;;  %v1713_v46 = vpack.c.bf16 %v235_v37, %v233_v36  ;;  %v1455_v63 = vld [vmem:[%s3088_s3 + $0x508] sm:$0xff]  ;;  %v1454_v10 = vld [vmem:[%s3088_s3 + $0x500] sm:$0xff] }
  0xf6   :  { %1696 = vmatprep.subr.bf16.mxu1 %v1695_v25  ;;  %v231_v25 = vld [vmem:[%s3088_s3 + $0xb0] sm:$0xff]  ;;  %v1715_v52 = vpack.c.bf16 %v240_v40, %v238_v39  ;;  %v1809_v56 = vpack.c.bf16 %v1448_v45, %v1446_v42  ;;  %v1459_v13 = vld [vmem:[%s3088_s3 + $0x528] sm:$0xff]  ;;  %v1362_v16 = vld [vmem:[%s3088_s3 + $0x220] sm:$0xff] }
  0xf7   :  { %1790 = vmatpush1.bf16.msra.mxu0 %v1789_v51  ;;  %v1709_v32 = vpack.c.bf16 %v231_v25, %v229_v24  ;;  %v1453_v51 = vld [vmem:[%s3088_s3 + $0x4f8] sm:$0xff]  ;;  %v1367_v19 = vld [vmem:[%s3088_s3 + $0x248] sm:$0xff]  ;;  %v1458_v22 = vld [vmem:[%s3088_s3 + $0x520] sm:$0xff] }
  0xf8   :  { %1792 = vmatprep.subr.bf16.mxu0 %v1791_v55  ;;  %v239_v55 = vld [vmem:[%s3088_s3 + $0xf0] sm:$0xff]  ;;  %v1811_v59 = vpack.c.bf16 %v1453_v51, %v1451_v47  ;;  %v1463_v25 = vld [vmem:[%s3088_s3 + $0x548] sm:$0xff]  ;;  %v1366_v27 = vld [vmem:[%s3088_s3 + $0x240] sm:$0xff] }
  0xf9   :  { %1698 = vmatpush1.bf16.msra.mxu1 %v1697_v58  ;;  %v1361_v58 = vld [vmem:[%s3088_s3 + $0x218] sm:$0xff]  ;;  %v1717_v62 = vpack.c.bf16 %v239_v55, %v237_v53  ;;  %v1368_v28 = vld [vmem:[%s3088_s3 + $0x250] sm:$0xff]  ;;  %v1371_v30 = vld [vmem:[%s3088_s3 + $0x268] sm:$0xff] }
  0xfa   :  { %1700 = vmatprep.subr.bf16.mxu1 %v1699_v61  ;;  %v1452_v61 = vld [vmem:[%s3088_s3 + $0x4f0] sm:$0xff]  ;;  %v1719_v1 = vpack.c.bf16 %v1361_v58, %v1359_v57  ;;  %v1729_v34 = vpack.c.bf16 %v1368_v28, %v1366_v27  ;;  %v1469_v36 = vld [vmem:[%s3088_s3 + $0x578] sm:$0xff] }
  0xfb   :  { %1794 = vmatpush1.bf16.msra.mxu0 %v1793_v0  ;;  %v1457_v0 = vld [vmem:[%s3088_s3 + $0x518] sm:$0xff]  ;;  %v1813_v5 = vpack.c.bf16 %v1452_v61, %v1450_v60  ;;  %v1464_v33 = vld [vmem:[%s3088_s3 + $0x550] sm:$0xff] }
  0xfc   :  { %1796 = vmatprep.subr.bf16.mxu0 %v1795_v4  ;;  %v1360_v4 = vld [vmem:[%s3088_s3 + $0x210] sm:$0xff]  ;;  %v1815_v9 = vpack.c.bf16 %v1457_v0, %v1455_v63  ;;  %v1377_v42 = vld [vmem:[%s3088_s3 + $0x298] sm:$0xff] }
  0xfd   :  { %1702 = vmatpush1.bf16.msra.mxu1 %v1701_v8  ;;  %v1365_v8 = vld [vmem:[%s3088_s3 + $0x238] sm:$0xff]  ;;  %v1721_v12 = vpack.c.bf16 %v1360_v4, %v1358_v2  ;;  %v1372_v39 = vld [vmem:[%s3088_s3 + $0x270] sm:$0xff] }
  0xfe   :  { %1704 = vmatprep.subr.bf16.mxu1 %v1703_v11  ;;  %v1456_v11 = vld [vmem:[%s3088_s3 + $0x510] sm:$0xff]  ;;  %v1723_v15 = vpack.c.bf16 %v1365_v8, %v1363_v7  ;;  %v1473_v53 = vld [vmem:[%s3088_s3 + $0x598] sm:$0xff] }
  0xff   :  { %1798 = vmatpush1.bf16.msra.mxu0 %v1797_v14  ;;  %v1461_v14 = vld [vmem:[%s3088_s3 + $0x538] sm:$0xff]  ;;  %v1817_v18 = vpack.c.bf16 %v1456_v11, %v1454_v10  ;;  %v1468_v47 = vld [vmem:[%s3088_s3 + $0x570] sm:$0xff] }
 0x100   :  { %1800 = vmatprep.subr.bf16.mxu0 %v1799_v17  ;;  %v1364_v17 = vld [vmem:[%s3088_s3 + $0x230] sm:$0xff]  ;;  %v1819_v21 = vpack.c.bf16 %v1461_v14, %v1459_v13  ;;  %v1381_v60 = vld [vmem:[%s3088_s3 + $0x2b8] sm:$0xff] }
 0x101   :  { %1706 = vmatpush1.bf16.msra.mxu1 %v1705_v20  ;;  %v1369_v20 = vld [vmem:[%s3088_s3 + $0x258] sm:$0xff]  ;;  %v1725_v24 = vpack.c.bf16 %v1364_v17, %v1362_v16  ;;  %v1376_v57 = vld [vmem:[%s3088_s3 + $0x290] sm:$0xff] }
 0x102   :  { %1708 = vmatprep.subr.bf16.mxu1 %v1707_v23  ;;  %v1460_v23 = vld [vmem:[%s3088_s3 + $0x530] sm:$0xff]  ;;  %v1477_v2 = vld [vmem:[%s3088_s3 + $0x5b8] sm:$0xff] }
 0x103   :  { %1802 = vmatpush1.bf16.msra.mxu0 %v1801_v26  ;;  %v1727_v26 = vpack.c.bf16 %v1369_v20, %v1367_v19  ;;  %v1472_v63 = vld [vmem:[%s3088_s3 + $0x590] sm:$0xff]  ;;  %v1385_v10 = vld [vmem:[%s3088_s3 + $0x2d8] sm:$0xff] }
 0x104   :  { %1804 = vmatprep.subr.bf16.mxu0 %v1803_v29  ;;  %v1821_v29 = vpack.c.bf16 %v1460_v23, %v1458_v22  ;;  %v1380_v7 = vld [vmem:[%s3088_s3 + $0x2b0] sm:$0xff]  ;;  %v1481_v16 = vld [vmem:[%s3088_s3 + $0x5d8] sm:$0xff] }
 0x105   :  { %1710 = vmatpush1.bf16.msra.mxu1 %v1709_v32  ;;  %v1462_v32 = vld [vmem:[%s3088_s3 + $0x540] sm:$0xff]  ;;  %v1476_v13 = vld [vmem:[%s3088_s3 + $0x5b0] sm:$0xff]  ;;  %v1389_v22 = vld [vmem:[%s3088_s3 + $0x2f8] sm:$0xff] }
 0x106   :  { %1712 = vmatprep.subr.bf16.mxu1 %v1711_v35  ;;  %v1467_v35 = vld [vmem:[%s3088_s3 + $0x568] sm:$0xff]  ;;  %v1825_v40 = vpack.c.bf16 %v1464_v33, %v1462_v32  ;;  %v1384_v19 = vld [vmem:[%s3088_s3 + $0x2d0] sm:$0xff]  ;;  %v1485_v27 = vld [vmem:[%s3088_s3 + $0x5f8] sm:$0xff] }
 0x107   :  { %1806 = vmatpush1.bf16.msra.mxu0 %v1805_v38  ;;  %v1370_v38 = vld [vmem:[%s3088_s3 + $0x260] sm:$0xff]  ;;  %v1827_v45 = vpack.c.bf16 %v1469_v36, %v1467_v35  ;;  %v1484_v33 = vld [vmem:[%s3088_s3 + $0x5f0] sm:$0xff]  ;;  %v1487_v35 = vld [vmem:[%s3088_s3 + $0x608] sm:$0xff] }
 0x108   :  { %1808 = vmatprep.subr.bf16.mxu0 %v1807_v41  ;;  %v1375_v41 = vld [vmem:[%s3088_s3 + $0x288] sm:$0xff]  ;;  %v1733_v51 = vpack.c.bf16 %v1372_v39, %v1370_v38  ;;  %v1482_v32 = vld [vmem:[%s3088_s3 + $0x5e0] sm:$0xff]  ;;  %v1489_v36 = vld [vmem:[%s3088_s3 + $0x618] sm:$0xff] }
 0x109   :  { %1714 = vmatpush1.bf16.msra.mxu1 %v1713_v46  ;;  %v1466_v46 = vld [vmem:[%s3088_s3 + $0x560] sm:$0xff]  ;;  %v1735_v55 = vpack.c.bf16 %v1377_v42, %v1375_v41  ;;  %v1847_v38 = vpack.c.bf16 %v1489_v36, %v1487_v35  ;;  %v1491_v41 = vld [vmem:[%s3088_s3 + $0x628] sm:$0xff]  ;;  %v1493_v42 = vld [vmem:[%s3088_s3 + $0x638] sm:$0xff] }
 0x10a   :  { %1716 = vmatprep.subr.bf16.mxu1 %v1715_v52  ;;  %v1471_v52 = vld [vmem:[%s3088_s3 + $0x588] sm:$0xff]  ;;  %v1829_v58 = vpack.c.bf16 %v1468_v47, %v1466_v46  ;;  %v1486_v39 = vld [vmem:[%s3088_s3 + $0x600] sm:$0xff]  ;;  %v1851_v46 = vpack.c.bf16 %v1493_v42, %v1491_v41  ;;  %v1529_v36 = vld [vmem:[%s3088_s3 + $0x758] sm:$0xff] }
 0x10b   :  { %1810 = vmatpush1.bf16.msra.mxu0 %v1809_v56  ;;  %v1374_v56 = vld [vmem:[%s3088_s3 + $0x280] sm:$0xff]  ;;  %v1831_v61 = vpack.c.bf16 %v1473_v53, %v1471_v52  ;;  %v1495_v52 = vld [vmem:[%s3088_s3 + $0x648] sm:$0xff]  ;;  %v1497_v53 = vld [vmem:[%s3088_s3 + $0x658] sm:$0xff] }
 0x10c   :  { %1812 = vmatprep.subr.bf16.mxu0 %v1811_v59  ;;  %v1379_v59 = vld [vmem:[%s3088_s3 + $0x2a8] sm:$0xff]  ;;  %v1737_v0 = vpack.c.bf16 %v1376_v57, %v1374_v56  ;;  %v1490_v47 = vld [vmem:[%s3088_s3 + $0x620] sm:$0xff]  ;;  %v1496_v57 = vld [vmem:[%s3088_s3 + $0x650] sm:$0xff] }
 0x10d   :  { %1718 = vmatpush1.bf16.msra.mxu1 %v1717_v62  ;;  %v1470_v62 = vld [vmem:[%s3088_s3 + $0x580] sm:$0xff]  ;;  %v1739_v4 = vpack.c.bf16 %v1381_v60, %v1379_v59  ;;  %v1527_v35 = vld [vmem:[%s3088_s3 + $0x748] sm:$0xff] }
 0x10e   :  { %1720 = vmatprep.subr.bf16.mxu1 %v1719_v1  ;;  %v1475_v1 = vld [vmem:[%s3088_s3 + $0x5a8] sm:$0xff]  ;;  %v1833_v8 = vpack.c.bf16 %v1472_v63, %v1470_v62  ;;  %v1494_v56 = vld [vmem:[%s3088_s3 + $0x640] sm:$0xff]  ;;  %v1500_v62 = vld [vmem:[%s3088_s3 + $0x670] sm:$0xff] }
 0x10f   :  { %1814 = vmatpush1.bf16.msra.mxu0 %v1813_v5  ;;  %v1378_v5 = vld [vmem:[%s3088_s3 + $0x2a0] sm:$0xff]  ;;  %v1835_v11 = vpack.c.bf16 %v1477_v2, %v1475_v1  ;;  %v1857_v59 = vpack.c.bf16 %v1496_v57, %v1494_v56  ;;  %v1503_v63 = vld [vmem:[%s3088_s3 + $0x688] sm:$0xff]  ;;  %v1536_v56 = vld [vmem:[%s3088_s3 + $0x790] sm:$0xff] }
 0x110   :  { %414 = vmatmul.mubr.f32.vlgmr.msra.gmra.mrb[0].mxu1 %v2378_v43  ;;  %1816 = vmatprep.subr.bf16.mxu0 %v1815_v9  ;;  %v1465_v43 = vld [vmem:[%s3088_s3 + $0x558] sm:$0xff]  ;;  %v1383_v9 = vld [vmem:[%s3088_s3 + $0x2c8] sm:$0xff]  ;;  %v1741_v14 = vpack.c.bf16 %v1380_v7, %v1378_v5  ;;  %v1504_v5 = vld [vmem:[%s3088_s3 + $0x690] sm:$0xff] }
 0x111   :  { %1722 = vmatpush1.bf16.msra.mxu1 %v1721_v12  ;;  %522 = vmatprep.mubr.f32.mxu1 %v2016_v6  ;;  %v1823_v31 = vpack.c.bf16 %v1465_v43, %v1463_v25  ;;  %v1474_v12 = vld [vmem:[%s3088_s3 + $0x5a0] sm:$0xff]  ;;  %v1743_v17 = vpack.c.bf16 %v1385_v10, %v1383_v9  ;;  %v1480_v25 = vld [vmem:[%s3088_s3 + $0x5d0] sm:$0xff]  ;;  %v1507_v7 = vld [vmem:[%s3088_s3 + $0x6a8] sm:$0xff] }
 0x112   :  { %745 = vmatmul.mubr.f32.vlgmr.msra.gmra.mrb[4].mxu0 %v2381_v44  ;;  %1724 = vmatprep.subr.bf16.mxu1 %v1723_v15  ;;  %v1373_v44 = vld [vmem:[%s3088_s3 + $0x278] sm:$0xff]  ;;  %v1479_v15 = vld [vmem:[%s3088_s3 + $0x5c8] sm:$0xff]  ;;  %v1837_v20 = vpack.c.bf16 %v1476_v13, %v1474_v12  ;;  %v1508_v12 = vld [vmem:[%s3088_s3 + $0x6b0] sm:$0xff] }
 0x113   :  { %1818 = vmatpush1.bf16.msra.mxu0 %v1817_v18  ;;  %855 = vmatprep.mubr.f32.mxu0 %v2016_v6  ;;  %v1731_v37 = vpack.c.bf16 %v1373_v44, %v1371_v30  ;;  %v1382_v18 = vld [vmem:[%s3088_s3 + $0x2c0] sm:$0xff]  ;;  %v1839_v23 = vpack.c.bf16 %v1481_v16, %v1479_v15  ;;  %v1388_v30 = vld [vmem:[%s3088_s3 + $0x2f0] sm:$0xff]  ;;  %v1511_v13 = vld [vmem:[%s3088_s3 + $0x6c8] sm:$0xff] }
 0x114   :  { %1820 = vmatprep.subr.bf16.mxu0 %v1819_v21  ;;  %v1387_v21 = vld [vmem:[%s3088_s3 + $0x2e8] sm:$0xff]  ;;  %v1745_v43 = vpack.c.bf16 %v1384_v19, %v1382_v18  ;;  %v1512_v18 = vld [vmem:[%s3088_s3 + $0x6d0] sm:$0xff] }
 0x115   :  { %1726 = vmatpush1.bf16.msra.mxu1 %v1725_v24  ;;  %v1478_v24 = vld [vmem:[%s3088_s3 + $0x5c0] sm:$0xff]  ;;  %v1747_v28 = vpack.c.bf16 %v1389_v22, %v1387_v21  ;;  %v1515_v19 = vld [vmem:[%s3088_s3 + $0x6e8] sm:$0xff] }
 0x116   :  { %1728 = vmatprep.subr.bf16.mxu1 %v1727_v26  ;;  %v1483_v26 = vld [vmem:[%s3088_s3 + $0x5e8] sm:$0xff]  ;;  %v1841_v44 = vpack.c.bf16 %v1480_v25, %v1478_v24  ;;  %v1516_v24 = vld [vmem:[%s3088_s3 + $0x6f0] sm:$0xff] }
 0x117   :  { %1822 = vmatpush1.bf16.msra.mxu0 %v1821_v29  ;;  %v1386_v29 = vld [vmem:[%s3088_s3 + $0x2e0] sm:$0xff]  ;;  %v1519_v25 = vld [vmem:[%s3088_s3 + $0x708] sm:$0xff] }
 0x118   :  { %1824 = vmatprep.subr.bf16.mxu0 %v1823_v31  ;;  %v1843_v31 = vpack.c.bf16 %v1485_v27, %v1483_v26  ;;  %v1531_v41 = vld [vmem:[%s3088_s3 + $0x768] sm:$0xff] }
 0x119   :  { %1730 = vmatpush1.bf16.msra.mxu1 %v1729_v34  ;;  %v1749_v34 = vpack.c.bf16 %v1388_v30, %v1386_v29  ;;  %v1520_v29 = vld [vmem:[%s3088_s3 + $0x710] sm:$0xff]  ;;  %v1523_v30 = vld [vmem:[%s3088_s3 + $0x728] sm:$0xff] }
 0x11a   :  { %1732 = vmatprep.subr.bf16.mxu1 %v1731_v37  ;;  %v1845_v37 = vpack.c.bf16 %v1484_v33, %v1482_v32  ;;  %v1522_v33 = vld [vmem:[%s3088_s3 + $0x720] sm:$0xff]  ;;  %v1539_v57 = vld [vmem:[%s3088_s3 + $0x7a8] sm:$0xff] }
 0x11b   :  { %1826 = vmatpush1.bf16.msra.mxu0 %v1825_v40  ;;  %v1488_v40 = vld [vmem:[%s3088_s3 + $0x610] sm:$0xff] }
 0x11c   :  { %1828 = vmatprep.subr.bf16.mxu0 %v1827_v45  ;;  %v1849_v45 = vpack.c.bf16 %v1488_v40, %v1486_v39  ;;  %v1526_v39 = vld [vmem:[%s3088_s3 + $0x740] sm:$0xff]  ;;  %v1528_v40 = vld [vmem:[%s3088_s3 + $0x750] sm:$0xff] }
 0x11d   :  { %1734 = vmatpush1.bf16.msra.mxu1 %v1733_v51  ;;  %v1492_v51 = vld [vmem:[%s3088_s3 + $0x630] sm:$0xff]  ;;  %v1889_v42 = vpack.c.bf16 %v1528_v40, %v1526_v39  ;;  %v1122_v40 = vld [vmem:[%s3090_s5 + $0xa0] sm:$0xff] }
 0x11e   :  { %1736 = vmatprep.subr.bf16.mxu1 %v1735_v55  ;;  %v1855_v55 = vpack.c.bf16 %v1497_v53, %v1495_v52  ;;  %v1537_v52 = vld [vmem:[%s3088_s3 + $0x798] sm:$0xff] }
 0x11f   :  { %1830 = vmatpush1.bf16.msra.mxu0 %v1829_v58  ;;  %v1499_v58 = vld [vmem:[%s3088_s3 + $0x668] sm:$0xff] }
 0x120   :  { %1832 = vmatprep.subr.bf16.mxu0 %v1831_v61  ;;  %v1498_v61 = vld [vmem:[%s3088_s3 + $0x660] sm:$0xff] }
 0x121   :  { %1738 = vmatpush1.bf16.msra.mxu1 %v1737_v0  ;;  %v1505_v0 = vld [vmem:[%s3088_s3 + $0x698] sm:$0xff]  ;;  %v1861_v1 = vpack.c.bf16 %v1500_v62, %v1498_v61  ;;  %v1540_v61 = vld [vmem:[%s3088_s3 + $0x7b0] sm:$0xff]  ;;  %v1543_v62 = vld [vmem:[%s3088_s3 + $0x7c8] sm:$0xff] }
 0x122   :  { %1740 = vmatprep.subr.bf16.mxu1 %v1739_v4  ;;  %v1863_v2 = vpack.c.bf16 %v1505_v0, %v1503_v63  ;;  %v1502_v4 = vld [vmem:[%s3088_s3 + $0x680] sm:$0xff]  ;;  %v1545_v63 = vld [vmem:[%s3088_s3 + $0x7d8] sm:$0xff] }
 0x123   :  { %1834 = vmatpush1.bf16.msra.mxu0 %v1833_v8  ;;  %v1509_v8 = vld [vmem:[%s3088_s3 + $0x6b8] sm:$0xff]  ;;  %v1865_v9 = vpack.c.bf16 %v1504_v5, %v1502_v4  ;;  %v1544_v4 = vld [vmem:[%s3088_s3 + $0x7d0] sm:$0xff]  ;;  %v1547_v5 = vld [vmem:[%s3088_s3 + $0x7e8] sm:$0xff] }
 0x124   :  { %1836 = vmatprep.subr.bf16.mxu0 %v1835_v11  ;;  %v1867_v10 = vpack.c.bf16 %v1509_v8, %v1507_v7  ;;  %v1506_v11 = vld [vmem:[%s3088_s3 + $0x6a0] sm:$0xff]  ;;  %v1549_v7 = vld [vmem:[%s3088_s3 + $0x7f8] sm:$0xff] }
 0x125   :  { %1742 = vmatpush1.bf16.msra.mxu1 %v1741_v14  ;;  %v1513_v14 = vld [vmem:[%s3088_s3 + $0x6d8] sm:$0xff]  ;;  %v1869_v15 = vpack.c.bf16 %v1508_v12, %v1506_v11  ;;  %v1548_v11 = vld [vmem:[%s3088_s3 + $0x7f0] sm:$0xff] }
 0x126   :  { %1744 = vmatprep.subr.bf16.mxu1 %v1743_v17  ;;  %v1871_v16 = vpack.c.bf16 %v1513_v14, %v1511_v13  ;;  %v1510_v17 = vld [vmem:[%s3088_s3 + $0x6c0] sm:$0xff]  ;;  %v1103_v14 = vld [vmem:[%s3090_s5 + $0x8] sm:$0xff] }
 0x127   :  { %1838 = vmatpush1.bf16.msra.mxu0 %v1837_v20  ;;  %v1517_v20 = vld [vmem:[%s3088_s3 + $0x6f8] sm:$0xff]  ;;  %v1873_v21 = vpack.c.bf16 %v1512_v18, %v1510_v17  ;;  %v1102_v13 = vld [vmem:[%s3090_s5] sm:$0xff] }
 0x128   :  { %1840 = vmatprep.subr.bf16.mxu0 %v1839_v23  ;;  %v1875_v22 = vpack.c.bf16 %v1517_v20, %v1515_v19  ;;  %v1514_v23 = vld [vmem:[%s3088_s3 + $0x6e0] sm:$0xff]  ;;  %v1105_v17 = vld [vmem:[%s3090_s5 + $0x18] sm:$0xff]  ;;  %v1107_v19 = vld [vmem:[%s3090_s5 + $0x28] sm:$0xff] }
 0x129   :  { %1746 = vmatpush1.bf16.msra.mxu1 %v1745_v43  ;;  %v1521_v43 = vld [vmem:[%s3088_s3 + $0x718] sm:$0xff]  ;;  %v1877_v26 = vpack.c.bf16 %v1516_v24, %v1514_v23  ;;  %v1110_v24 = vld [vmem:[%s3090_s5 + $0x40] sm:$0xff] }
 0x12a   :  { %1748 = vmatprep.subr.bf16.mxu1 %v1747_v28  ;;  %v1879_v27 = vpack.c.bf16 %v1521_v43, %v1519_v25  ;;  %v1518_v28 = vld [vmem:[%s3088_s3 + $0x700] sm:$0xff]  ;;  %v1111_v25 = vld [vmem:[%s3090_s5 + $0x48] sm:$0xff] }
 0x12b   :  { %1842 = vmatpush1.bf16.msra.mxu0 %v1841_v44  ;;  %v1525_v44 = vld [vmem:[%s3088_s3 + $0x738] sm:$0xff]  ;;  %v1924_v43 = vpack.c.bf16 %v1111_v25, %v1110_v24 }
 0x12c   :  { %1844 = vmatprep.subr.bf16.mxu0 %v1843_v31  ;;  %v1881_v31 = vpack.c.bf16 %v1520_v29, %v1518_v28  ;;  %v1883_v32 = vpack.c.bf16 %v1525_v44, %v1523_v30  ;;  %v1114_v29 = vld [vmem:[%s3090_s5 + $0x60] sm:$0xff]  ;;  %v1115_v30 = vld [vmem:[%s3090_s5 + $0x68] sm:$0xff]  ;;  %v1223_v24 = vld [vmem:[%s3092_s7 + $0x78] sm:$0xff] }
 0x12d   :  { %1750 = vmatpush1.bf16.msra.mxu1 %v1749_v34  ;;  %v1524_v34 = vld [vmem:[%s3088_s3 + $0x730] sm:$0xff]  ;;  %v1930_v44 = vpack.c.bf16 %v1115_v30, %v1114_v29 }
 0x12e   :  { %1911 = vmatprep.subr.bf16.mxu1 %v2015_v3 }
 0x12f   :  { %1846 = vmatpush1.bf16.msra.mxu0 %v1845_v37  ;;  %v1885_v37 = vpack.c.bf16 %v1524_v34, %v1522_v33  ;;  %v1118_v34 = vld [vmem:[%s3090_s5 + $0x80] sm:$0xff] }
 0x130   :  { %523 = vmatmul.mubr.f32.vlgmr.msra.gmra.mrb[0].mxu1 %v2390_v48  ;;  %1848 = vmatprep.subr.bf16.mxu0 %v1847_v38  ;;  %v1853_v48 = vpack.c.bf16 %v1492_v51, %v1490_v47  ;;  %v1887_v38 = vpack.c.bf16 %v1529_v36, %v1527_v35  ;;  %v1532_v47 = vld [vmem:[%s3088_s3 + $0x770] sm:$0xff]  ;;  %v1535_v51 = vld [vmem:[%s3088_s3 + $0x788] sm:$0xff] }
 0x131   :  { %v1119_v35 = vld [vmem:[%s3090_s5 + $0x88] sm:$0xff] }
 0x132   :  { %856 = vmatmul.mubr.f32.vlgmr.msra.gmra.mrb[4].mxu0 %v2393_v49  ;;  %v1501_v49 = vld [vmem:[%s3088_s3 + $0x678] sm:$0xff]  ;;  %v1936_v36 = vpack.c.bf16 %v1119_v35, %v1118_v34 }
 0x133   :  { %1850 = vmatpush1.bf16.msra.mxu0 %v1849_v45  ;;  %966 = vmatprep.mubr.f32.mxu0 %v2016_v6  ;;  %v1859_v60 = vpack.c.bf16 %v1501_v49, %v1499_v58  ;;  %v1541_v58 = vld [vmem:[%s3088_s3 + $0x7b8] sm:$0xff] }
 0x134   :  { %1852 = vmatprep.subr.bf16.mxu0 %v1851_v46  ;;  %v1530_v46 = vld [vmem:[%s3088_s3 + $0x760] sm:$0xff] }
 0x135   :  { %v1893_v53 = vpack.c.bf16 %v1532_v47, %v1530_v46 }
 0x137   :  { %1854 = vmatpush1.bf16.msra.mxu0 %v1853_v48  ;;  %v1895_v48 = vpack.c.bf16 %v1537_v52, %v1535_v51  ;;  %v1088_v52 = vlaneseq }
 0x138   :  { %1856 = vmatprep.subr.bf16.mxu0 %v1855_v55  ;;  %v1534_v55 = vld [vmem:[%s3088_s3 + $0x780] sm:$0xff] }
 0x139   :  { %v1897_v49 = vpack.c.bf16 %v1536_v56, %v1534_v55  ;;  %v1086_v55 = vld [vmem:[%s3089_s4] sm:$0x3] }
 0x13b   :  { %1858 = vmatpush1.bf16.msra.mxu0 %v1857_v59  ;;  %v1899_v59 = vpack.c.bf16 %v1541_v58, %v1539_v57 }
 0x13c   :  { %1860 = vmatprep.subr.bf16.mxu0 %v1859_v60  ;;  %v1538_v60 = vld [vmem:[%s3088_s3 + $0x7a0] sm:$0xff] }
 0x13d   :  { %v1901_v0 = vpack.c.bf16 %v1540_v61, %v1538_v60 }
 0x13f   :  { %1862 = vmatpush1.bf16.msra.mxu0 %v1861_v1  ;;  %v1903_v1 = vpack.c.bf16 %v1545_v63, %v1543_v62  ;;  %v1208_v63 = vld [vmem:[%s3092_s7] sm:$0xff] }
 0x140   :  { %1864 = vmatprep.subr.bf16.mxu0 %v1863_v2  ;;  %v1542_v2 = vld [vmem:[%s3088_s3 + $0x7c0] sm:$0xff] }
 0x141   :  { %v1905_v8 = vpack.c.bf16 %v1544_v4, %v1542_v2 }
 0x143   :  { %1866 = vmatpush1.bf16.msra.mxu0 %v1865_v9  ;;  %v1907_v9 = vpack.c.bf16 %v1549_v7, %v1547_v5  ;;  %v1210_v7 = vld [vmem:[%s3092_s7 + $0x10] sm:$0xff] }
 0x144   :  { %1868 = vmatprep.subr.bf16.mxu0 %v1867_v10  ;;  %v1546_v10 = vld [vmem:[%s3088_s3 + $0x7e0] sm:$0xff] }
 0x145   :  { %v1909_v12 = vpack.c.bf16 %v1548_v11, %v1546_v10  ;;  %v1212_v10 = vld [vmem:[%s3092_s7 + $0x20] sm:$0xff]  ;;  %v1213_v11 = vld [vmem:[%s3092_s7 + $0x28] sm:$0xff] }
 0x147   :  { %1870 = vmatpush1.bf16.msra.mxu0 %v1869_v15  ;;  %v1104_v15 = vld [vmem:[%s3090_s5 + $0x10] sm:$0xff] }
 0x148   :  { %1872 = vmatprep.subr.bf16.mxu0 %v1871_v16  ;;  %v1912_v16 = vpack.c.bf16 %v1103_v14, %v1102_v13  ;;  %v1915_v18 = vpack.c.bf16 %v1105_v17, %v1104_v15  ;;  %v1214_v13 = vld [vmem:[%s3092_s7 + $0x30] sm:$0xff]  ;;  %v1216_v15 = vld [vmem:[%s3092_s7 + $0x40] sm:$0xff] }
 0x14a   :  { %1913 = vmatpush1.bf16.msra.mxu1 %v1912_v16  ;;  %v1217_v16 = vld [vmem:[%s3092_s7 + $0x48] sm:$0xff] }
 0x14b   :  { %1874 = vmatpush1.bf16.msra.mxu0 %v1873_v21  ;;  %1914 = vmatprep.subr.bf16.mxu1 %v2015_v3  ;;  %v1108_v21 = vld [vmem:[%s3090_s5 + $0x30] sm:$0xff]  ;;  %v1960_v17 = vpack.c.bf16 %v1217_v16, %v1216_v15 }
 0x14c   :  { %1876 = vmatprep.subr.bf16.mxu0 %v1875_v22  ;;  %v1109_v22 = vld [vmem:[%s3090_s5 + $0x38] sm:$0xff] }
 0x14d   :  { %v1921_v23 = vpack.c.bf16 %v1109_v22, %v1108_v21  ;;  %v1221_v21 = vld [vmem:[%s3092_s7 + $0x68] sm:$0xff] }
 0x14e   :  { %1916 = vmatpush1.bf16.msra.mxu1 %v1915_v18  ;;  %v1218_v18 = vld [vmem:[%s3092_s7 + $0x50] sm:$0xff] }
 0x14f   :  { %1878 = vmatpush1.bf16.msra.mxu0 %v1877_v26  ;;  %1917 = vmatprep.subr.bf16.mxu1 %v2015_v3  ;;  %v1112_v26 = vld [vmem:[%s3090_s5 + $0x50] sm:$0xff] }
 0x150   :  { %1880 = vmatprep.subr.bf16.mxu0 %v1879_v27  ;;  %v1113_v27 = vld [vmem:[%s3090_s5 + $0x58] sm:$0xff] }
 0x151   :  { %v1927_v28 = vpack.c.bf16 %v1113_v27, %v1112_v26 }
 0x152   :  { %967 = vmatmul.mubr.f32.vlgmr.msra.gmra.mrb[4].mxu0 %v2396_v50  ;;  %v1533_v50 = vld [vmem:[%s3088_s3 + $0x778] sm:$0xff] }
 0x153   :  { %1882 = vmatpush1.bf16.msra.mxu0 %v1881_v31  ;;  %1077 = vmatprep.mubr.f32.mxu0 %v2016_v6  ;;  %v1891_v45 = vpack.c.bf16 %v1533_v50, %v1531_v41  ;;  %v1116_v31 = vld [vmem:[%s3090_s5 + $0x70] sm:$0xff]  ;;  %v1123_v41 = vld [vmem:[%s3090_s5 + $0xa8] sm:$0xff] }
 0x154   :  { %1884 = vmatprep.subr.bf16.mxu0 %v1883_v32  ;;  %v1117_v32 = vld [vmem:[%s3090_s5 + $0x78] sm:$0xff]  ;;  %v1942_v50 = vpack.c.bf16 %v1123_v41, %v1122_v40 }
 0x155   :  { %v1933_v33 = vpack.c.bf16 %v1117_v32, %v1116_v31 }
 0x157   :  { %1886 = vmatpush1.bf16.msra.mxu0 %v1885_v37  ;;  %v1120_v37 = vld [vmem:[%s3090_s5 + $0x90] sm:$0xff] }
 0x158   :  { %1888 = vmatprep.subr.bf16.mxu0 %v1887_v38  ;;  %v1121_v38 = vld [vmem:[%s3090_s5 + $0x98] sm:$0xff] }
 0x159   :  { %v1939_v39 = vpack.c.bf16 %v1121_v38, %v1120_v37 }
 0x15b   :  { %1890 = vmatpush1.bf16.msra.mxu0 %v1889_v42  ;;  %v1124_v42 = vld [vmem:[%s3090_s5 + $0xb0] sm:$0xff] }
 0x15c   :  { %1892 = vmatprep.subr.bf16.mxu0 %v1891_v45  ;;  %v1125_v45 = vld [vmem:[%s3090_s5 + $0xb8] sm:$0xff] }
 0x15d   :  { %v1945_v46 = vpack.c.bf16 %v1125_v45, %v1124_v42 }
 0x15f   :  { %1894 = vmatpush1.bf16.msra.mxu0 %v1893_v53  ;;  %v1089_v53 = vshrl.u32 %v1088_v52, 7 }
 0x160   :  { %1896 = vmatprep.subr.bf16.mxu0 %v1895_v48 }
 0x161   :  { %v1090_v48 = vsub.s32 0, %v1089_v53  ;;  %v1094_v56 = vsub.s32 1, %v1089_v53 }
 0x163   :  { %1898 = vmatpush1.bf16.msra.mxu0 %v1897_v49  ;;  %v1091_v57 = vrot.slane %v1086_v55, %v1090_v48  ;;  %v1095_v49 = vrot.slane %v1086_v55, %v1094_v56 }
 0x164   :  { %1900 = vmatprep.subr.bf16.mxu0 %v1899_v59 }
 0x167   :  { %1902 = vmatpush1.bf16.msra.mxu0 %v1901_v0  ;;  %v1209_v0 = vld [vmem:[%s3092_s7 + $0x8] sm:$0xff] }
 0x168   :  { %1904 = vmatprep.subr.bf16.mxu0 %v1903_v1  ;;  %v1948_v4 = vpack.c.bf16 %v1209_v0, %v1208_v63 }
 0x16b   :  { %1906 = vmatpush1.bf16.msra.mxu0 %v1905_v8  ;;  %v1211_v8 = vld [vmem:[%s3092_s7 + $0x18] sm:$0xff] }
 0x16c   :  { %1908 = vmatprep.subr.bf16.mxu0 %v1907_v9  ;;  %v1951_v9 = vpack.c.bf16 %v1211_v8, %v1210_v7 }
 0x16f   :  { %1910 = vmatpush1.bf16.msra.mxu0 %v1909_v12  ;;  %v1954_v12 = vpack.c.bf16 %v1213_v11, %v1212_v10 }
 0x172   :  { %1078 = vmatmul.mubr.f32.vlgmr.msra.gmra.mrb[4].mxu0 %v2406_v54  ;;  %v1106_v54 = vld [vmem:[%s3090_s5 + $0x20] sm:$0xff] }
 0x173   :  { %v1918_v20 = vpack.c.bf16 %v1107_v19, %v1106_v54  ;;  %v1219_v54 = vld [vmem:[%s3092_s7 + $0x58] sm:$0xff] }
 0x174   :  { %v1963_v19 = vpack.c.bf16 %v1219_v54, %v1218_v18 }
 0x175   :  { %1919 = vmatpush1.bf16.msra.mxu1 %v1918_v20  ;;  %v1220_v20 = vld [vmem:[%s3092_s7 + $0x60] sm:$0xff] }
 0x176   :  { %1920 = vmatprep.subr.bf16.mxu1 %v2015_v3  ;;  %v1966_v22 = vpack.c.bf16 %v1221_v21, %v1220_v20 }
 0x179   :  { %1922 = vmatpush1.bf16.msra.mxu1 %v1921_v23  ;;  %v1222_v23 = vld [vmem:[%s3092_s7 + $0x70] sm:$0xff] }
 0x17a   :  { %1923 = vmatprep.subr.bf16.mxu1 %v2015_v3  ;;  %v1969_v25 = vpack.c.bf16 %v1223_v24, %v1222_v23 }
 0x17d   :  { %1925 = vmatpush1.bf16.msra.mxu1 %v1924_v43  ;;  %v1550_v43 = vld [vmem:[%s3091_s6] ss:$0 sm:$0xff] }
 0x17e   :  { %1926 = vmatprep.subr.bf16.mxu1 %v2015_v3 }
 0x181   :  { %1928 = vmatpush1.bf16.msra.mxu1 %v1927_v28 }
 0x182   :  { %1929 = vmatprep.subr.bf16.mxu1 %v2015_v3 }
 0x185   :  { %1931 = vmatpush1.bf16.msra.mxu1 %v1930_v44 }
 0x186   :  { %1932 = vmatprep.subr.bf16.mxu1 %v2015_v3 }
 0x189   :  { %1934 = vmatpush1.bf16.msra.mxu1 %v1933_v33 }
 0x18a   :  { %1935 = vmatprep.subr.bf16.mxu1 %v2015_v3 }
 0x18d   :  { %1937 = vmatpush1.bf16.msra.mxu1 %v1936_v36 }
 0x18e   :  { %1938 = vmatprep.subr.bf16.mxu1 %v2015_v3 }
 0x191   :  { %1940 = vmatpush1.bf16.msra.mxu1 %v1939_v39 }
 0x192   :  { %1941 = vmatprep.subr.bf16.mxu1 %v2015_v3 }
 0x195   :  { %1943 = vmatpush1.bf16.msra.mxu1 %v1942_v50 }
 0x196   :  { %1944 = vmatprep.subr.bf16.mxu1 %v2015_v3 }
 0x199   :  { %1946 = vmatpush1.bf16.msra.mxu1 %v1945_v46 }
 0x19a   :  { %1947 = vmatprep.subr.bf16.mxu1 %v2015_v3 }
 0x203   :  { %v524_v47 = vpop.f32.mrb[0].mxu1 }
 0x204   :  { %v526_v51 = vpop.f32.mrb[1].mxu1 }
 0x245   :  { %v1079_v58 = vpop.f32.mrb[4].mxu0 }
 0x246   :  { %v1971_v59 = vadd.f32 %v1079_v58, %v524_v47  ;;  %v1081_v60 = vpop.f32.mrb[5].mxu0 }
 0x247   :  { %v1972_v61 = vadd.f32 %v1081_v60, %v526_v51 }
 0x248   :  { %v1098_v62 = vadd.f32 %v1971_v59, %v1091_v57 }
 0x249   :  { %v1099_v1 = vadd.f32 %v1972_v61, %v1095_v49 }
 0x24a   :  { %v1100_v5 = vmax.f32 %v1098_v62, 0.0 }
 0x24b   :  { %v1101_v2 = vmax.f32 %v1099_v1, 0.0 }
 0x24d   :  { %1551 = vmatprep.mubr.msk.f32.mxu1 %vm1133_vm4, %v1101_v2 }
 0x24e   :  { %1202 = vmatmul.mubr.f32.vlgmr.msra.gmra.mrb[2].mxu1 %v1100_v5 }
 0x24f   :  { %1949 = vmatpush3.bf16.msra.mxu1 %v1948_v4  ;;  %1640 = vmatprep.mubr.msk.f32.mxu1 %vm2017_vm0, %v2016_v6  ;;  %v1215_v6 = vld [vmem:[%s3092_s7 + $0x38] sm:$0xff]  ;;  %s1991_s7 = scalar_lea.vmem %s1310_s2, 32 }
 0x250   :  { %1950 = vmatprep.subr.bf16.mxu1 %v2015_v3  ;;  %v1957_v14 = vpack.c.bf16 %v1215_v6, %v1214_v13  ;;  %p1992_p0 = scmp.ne.s32.totalorder %s1310_s2, %s1991_s7  ;;  %p1997_p2 = scmp.lt.s32.totalorder %s1991_s7, %s1991_s7 }
 0x252   :  { %p1998_p3 = por %p1997_p2, %p1996_p1 }
 0x253   :  { %1952 = vmatpush3.bf16.msra.mxu1 %v1951_v9 }
 0x254   :  { %1953 = vmatprep.subr.bf16.mxu1 %v2015_v3  ;;  %p1999_p4 = pnand %p1998_p3, %p1992_p0 }
 0x257   :  { %1955 = vmatpush3.bf16.msra.mxu1 %v1954_v12 }
 0x258   :  { %1956 = vmatprep.subr.bf16.mxu1 %v2015_v3 }
 0x25b   :  { %1958 = vmatpush3.bf16.msra.mxu1 %v1957_v14 }
 0x25c   :  { %1959 = vmatprep.subr.bf16.mxu1 %v2015_v3 }
 0x25f   :  { %1961 = vmatpush3.bf16.msra.mxu1 %v1960_v17 }
 0x260   :  { %1962 = vmatprep.subr.bf16.mxu1 %v2015_v3 }
 0x263   :  { %1964 = vmatpush3.bf16.msra.mxu1 %v1963_v19 }
 0x264   :  { %1965 = vmatprep.subr.bf16.mxu1 %v2015_v3 }
 0x267   :  { %1967 = vmatpush3.bf16.msra.mxu1 %v1966_v22 }
 0x268   :  { %1968 = vmatprep.subr.bf16.mxu1 %v2015_v3  ;;  %v1552_v3 = vld [vmem:[%s3093_s8] ss:$0 sm:$0xff] }
 0x26b   :  { %1970 = vmatpush3.bf16.msra.mxu1 %v1969_v25 }
 0x321   :  { %v1203_v26 = vpop.f32.mrb[2].mxu1 }
 0x322   :  { %v1204_v27 = vadd.f32 %v1550_v43, %v1203_v26  ;;  %v1205_v28 = vpop.f32.mrb[3].mxu1 }
 0x324   :  { %v1207_v29 = vmax.f32 %v1204_v27, 0.0 }
 0x326   :  { %1641 = vmatmul.mubr.f32.vlgmr.msra.gmra.mrb[4].mxu1 %v1207_v29 }
 0x3f9   :  { %v1297_v30 = vpop.f32.mrb[4].mxu1 }
 0x3fa   :  { %v1298_v44 = vadd.f32 %v1552_v3, %v1297_v30  ;;  %v1642_v31 = vpop.f32.mrb[5].mxu1 }
 0x3fc   :  { %1302 = vst.msk [vmem:[#allocation2] sm:$0x3] %vm1301_vm5, %v1298_v44 }
 0x3fd   :  { %2002 = shalt.err (!%p1999_p4)
}
 0x3fe   :  { %s2003_s1 = scalar_lea.hbm %s3094_s9, 32 }
 0x3ff   :  { %p2004_p5 = scmp.ne.s32.totalorder %s3094_s9, %s2003_s1  ;;  %p2007_p6 = scmp.lt.u32.totalorder %s2003_s1, %s3094_s9 }
 0x401   :  { %p2009_p7 = pnand %p2007_p6, %p2004_p5 }
 0x403   :  { %2012 = shalt.err (!%p2009_p7)
}
 0x404   :  { %1312 = dma.vmem_to_hbm [thread:$0]  %s1310_s2, 32, %s3094_s9, [#allocation3]  }
 0x405   :  { %2013 = dma.done.wait [#allocation3], 32  }
 0x406   :  { %2014 = vsyncadd [#allocation3], 4294967264 }
 0x407   :  { %1316 = vsyncpa [#allocation3], 1 }

</bundles_post_ra>
